<compile_context>
chip_gen: v6e
topology: v6e:2x2x1
jax: 0.10.0
libtpu: 0.0.40
codegen_flags: <defaults>
</compile_context>

<pallas_src>
import jax
import jax.numpy as jnp
from jax import lax
from jax.experimental import pallas as pl
from jax.experimental.pallas import tpu as pltpu

_UNROLL_MAX_STEPS = 32


def ssa_kernel(emb_ref,                       # (L, Bb, E)  bf16, time-major
               w_ih_ref, b_ih_ref,            # (E, 4H) bf16, (1, 4H) f32
               w_hh_ref, b_hh_ref,            # (H, 4H) bf16, (1, 4H) f32
               ws1_w_ref, ws1_b_ref,          # (H, Da) bf16, (1, Da) f32
               ws2_w_ref, ws2_b_ref,          # (Da, R) bf16, (1, R) f32
               inter2_w_ref, inter2_b_ref,    # (H, D2) bf16, (1, D2) f32
               final_w_ref, final_b_ref,      # (D2, C) bf16, (1, C) f32
               logp_ref,                      # out: (Bb, C)    f32
               att_ref,                       # out: (L, R, Bb) f32, lane-dense
               xg_scratch,                    # VMEM: (L, Bb, 4H) f32
               outs_scratch):                 # VMEM: (L, Bb, H)  bf16
    L, Bb, E = emb_ref.shape
    H = w_hh_ref.shape[0]
    R = ws2_w_ref.shape[1]
    G = 4 * H
    unroll = L <= _UNROLL_MAX_STEPS

    # ---- gate-lane constants (hoisted out of the recurrence) ----------------
    # PyTorch gate order (i, f, g, o): g lanes [2H, 3H) use tanh, rest sigmoid.
    # tanh(x) = 2*sigmoid(2x) - 1 -> pre-scale g lanes by 2, one sigmoid, fix-up.
    lane = lax.broadcasted_iota(jnp.int32, (1, G), 1)
    g_lane = (lane >= 2 * H) & (lane < 3 * H)
    gmul = jnp.where(g_lane, 2.0, 1.0).astype(jnp.float32)         # (1, G)
    goff = jnp.where(g_lane, 1.0, 0.0).astype(jnp.float32)         # (1, G)
    gmul_b = jnp.broadcast_to(gmul, (Bb, G))                        # hoisted
    goff_b = jnp.broadcast_to(goff, (Bb, G))
    w_hh_s = w_hh_ref[...] * gmul.astype(jnp.bfloat16)              # exact x2/x1

    # ---- input projection hoisted out of the recurrence ---------------------
    bias = (b_ih_ref[...] + b_hh_ref[...]) * gmul                   # (1, G) f32
    emb_flat = emb_ref[...].reshape(L * Bb, E)                      # bf16
    xg = jnp.dot(emb_flat, w_ih_ref[...],
                 preferred_element_type=jnp.float32) * gmul + bias
    xg_scratch[...] = xg.reshape(L, Bb, G)                          # written once

    # ---- single-layer LSTM recurrence (serial critical path) ----------------
    def lstm_step(t, h, c):
        gates = xg_scratch[t] + jnp.dot(h.astype(jnp.bfloat16), w_hh_s,
                                        preferred_element_type=jnp.float32)
        s = jax.nn.sigmoid(gates)                   # one EUP pass over 4H lanes
        act = s * gmul_b - goff_b                   # tanh fix-up on g lanes
        i_g = act[:, 0 * H:1 * H]
        f_g = act[:, 1 * H:2 * H]
        g_g = act[:, 2 * H:3 * H]
        o_g = act[:, 3 * H:4 * H]
        c = f_g * c + i_g * g_g
        h = o_g * jnp.tanh(c)
        outs_scratch[t] = h.astype(jnp.bfloat16)    # leading-axis store
        return h, c

    h0 = jnp.zeros((Bb, H), jnp.float32)
    c0 = jnp.zeros((Bb, H), jnp.float32)
    if unroll:
        h, c = h0, c0
        for t in range(L):
            h, c = lstm_step(t, h, c)
    else:
        _ = lax.fori_loop(0, L, lambda t, hc: lstm_step(t, *hc), (h0, c0))

    # ---- structured self-attention head -------------------------------------
    o2 = outs_scratch[...].reshape(L * Bb, H)                       # bf16
    a1 = jnp.tanh(jnp.dot(o2, ws1_w_ref[...],
                          preferred_element_type=jnp.float32) + ws1_b_ref[...])
    scores = (jnp.dot(a1.astype(jnp.bfloat16), ws2_w_ref[...],
                      preferred_element_type=jnp.float32)
              + ws2_b_ref[...]).reshape(L, Bb, R)

    # softmax over the sequence axis (axis=0 in time-major layout)
    m = jnp.max(scores, axis=0, keepdims=True)
    e = jnp.exp(scores - m)
    att = e / jnp.sum(e, axis=0, keepdims=True)                     # (L, Bb, R)

    # Lane-dense attention store ((R, Bb) per step, batch on the lane axis),
    # fused with the avg-sentence-embedding accumulation:
    #   avg[b,h] = (1/R) * sum_l (sum_r att[l,b,r]) * outs[l,b,h]
    inv_r = 1.0 / R
    if unroll:
        acc = jnp.zeros((Bb, H), jnp.float32)
        for t in range(L):
            a_t = att[t]                                            # (Bb, R)
            att_ref[t] = a_t.T                                      # (R, Bb)
            acc = acc + (jnp.sum(a_t, axis=1, keepdims=True)
                         * outs_scratch[t].astype(jnp.float32))
        avg = acc * inv_r
    else:
        att_ref[...] = jnp.transpose(att, (0, 2, 1))                # (L, R, Bb)
        w_bl = jnp.sum(att, axis=2).T                               # (Bb, L)

        def avg_step(t, acc):
            w_col = lax.dynamic_slice_in_dim(w_bl, t, 1, axis=1)    # (Bb, 1)
            return acc + w_col * outs_scratch[t].astype(jnp.float32)

        avg = lax.fori_loop(0, L, avg_step,
                            jnp.zeros((Bb, H), jnp.float32)) * inv_r

    # ---- classifier head -----------------------------------------------------
    inter2 = jax.nn.sigmoid(
        jnp.dot(avg.astype(jnp.bfloat16), inter2_w_ref[...],
                preferred_element_type=jnp.float32) + inter2_b_ref[...])
    logits = (jnp.dot(inter2.astype(jnp.bfloat16), final_w_ref[...],
                      preferred_element_type=jnp.float32) + final_b_ref[...])
    lmax = jnp.max(logits, axis=1, keepdims=True)
    lse = jnp.log(jnp.sum(jnp.exp(logits - lmax), axis=1, keepdims=True)) + lmax
    logp_ref[...] = logits - lse                                    # log_softmax


def _round_up(x, m):
    return -(-x // m) * m


def _pick_batch_block(batch, batch_block):
    """Batch block satisfying the (8,128) tiling constraints; prefers >= 2 grid
    steps (so v7x's two TensorCores both get work) when the batch allows."""
    if batch > batch_block:
        b_blk = batch_block                          # multiple of 128 (asserted)
    else:
        half = _round_up(-(-batch // 2), 128)        # lane-aligned half batch
        b_blk = half if half < batch else _round_up(batch, 8)
    b_pad = _round_up(batch, b_blk)
    return b_blk, b_pad


def _vmem_limit_bytes(L, b_blk, E, H, Da, R, D2, C):
    """Explicit VMEM budget (the scoped defaults are only 16/32 MiB)."""
    def tile(r, c, item):
        return _round_up(r, 8) * _round_up(c, 128) * item
    f32, bf16 = 4, 2
    G = 4 * H
    total = 0
    total += 2 * L * tile(b_blk, E, bf16)            # emb blocks (double-buffered)
    total += 2 * L * tile(R, b_blk, f32)             # attention out blocks
    total += 2 * tile(b_blk, C, f32)                 # logp out blocks
    weights = (tile(E, G, bf16) + tile(H, G, bf16) + 2 * tile(1, G, f32)
               + tile(H, Da, bf16) + tile(1, Da, f32)
               + tile(Da, R, bf16) + tile(1, R, f32)
               + tile(H, D2, bf16) + tile(1, D2, f32)
               + tile(D2, C, bf16) + tile(1, C, f32))
    total += 2 * weights                             # pinned weights
    total += L * tile(b_blk, G, f32)                 # xg_scratch
    total += L * tile(b_blk, H, bf16)                # outs_scratch (bf16)
    total += 3 * L * tile(b_blk, G, f32)             # headroom for temporaries
    return int(min(max(total, 32 * 1024 * 1024), 64 * 1024 * 1024))


def structured_self_attention_forward(token_ids, params, *, batch_block=256):
    """Fused forward pass.  Returns (log_probs (B, C), attention (B, R, L))."""
    assert batch_block % 128 == 0
    B, L = token_ids.shape
    E = params['embedding'].shape[1]
    H = params['w_hh_T'].shape[0]
    Da = params['ws1_w_T'].shape[1]
    R = params['ws2_w_T'].shape[1]
    D2 = params['inter2_w_T'].shape[1]
    C = params['final_w_T'].shape[1]

    b_blk, b_pad = _pick_batch_block(B, batch_block)
    tok = token_ids
    if b_pad != B:
        tok = jnp.pad(token_ids, ((0, b_pad - B), (0, 0)))

    # Embedding lookup (gather) stays in plain JAX, emitted time-major & bf16.
    # TODO(synk): at production vocab/emb sizes (esp. on v5e's HBM bandwidth),
    # move this gather into the kernel via PrefetchScalarGridSpec (token_ids as
    # scalar prefetch) to skip one HBM round trip.
    emb = jnp.take(params['embedding'], tok.T, axis=0).astype(jnp.bfloat16)

    bf = jnp.bfloat16
    w_args = (params['w_ih_T'].astype(bf),     params['b_ih'],
              params['w_hh_T'].astype(bf),     params['b_hh'],
              params['ws1_w_T'].astype(bf),    params['ws1_b'],
              params['ws2_w_T'].astype(bf),    params['ws2_b'],
              params['inter2_w_T'].astype(bf), params['inter2_b'],
              params['final_w_T'].astype(bf),  params['final_b'])

    grid = (b_pad // b_blk,)
    emb_spec = pl.BlockSpec((L, b_blk, E), lambda i: (0, i, 0))
    # TODO(synk): pinned weights are still double-buffered by default; when
    # pipeline_mode=pl.Buffered(1) on constant-index inputs is load-bearing in
    # the deployed jax release, single-buffer them to reclaim VMEM.
    w_specs = [pl.BlockSpec(w.shape, lambda i: (0, 0)) for w in w_args]

    logp, att_lrb = pl.pallas_call(
        ssa_kernel,
        out_shape=(jax.ShapeDtypeStruct((b_pad, C), jnp.float32),
                   jax.ShapeDtypeStruct((L, R, b_pad), jnp.float32)),
        grid=grid,
        in_specs=[emb_spec] + w_specs,
        out_specs=(pl.BlockSpec((b_blk, C), lambda i: (i, 0)),
                   pl.BlockSpec((L, R, b_blk), lambda i: (0, 0, i))),
        scratch_shapes=[pltpu.VMEM((L, b_blk, 4 * H), jnp.float32),
                        pltpu.VMEM((L, b_blk, H), jnp.bfloat16)],
        compiler_params=pltpu.CompilerParams(
            dimension_semantics=("parallel",),
            vmem_limit_bytes=_vmem_limit_bytes(L, b_blk, E, H, Da, R, D2, C)),
    )(emb, *w_args)

    # layout plumbing: module returns attention as (B, R, L)
    attention = jnp.transpose(att_lrb, (2, 1, 0))[:B]
    return logp[:B], attention


def reference_forward(token_ids, params):
    """Pure-JAX f32 reference of the same forward pass (for validation)."""
    emb = jnp.take(params['embedding'], token_ids, axis=0).astype(jnp.float32)
    B, L, _ = emb.shape
    H = params['w_hh_T'].shape[0]
    R = params['ws2_w_T'].shape[1]
    bias = params['b_ih'] + params['b_hh']
    h = jnp.zeros((B, H), jnp.float32)
    c = jnp.zeros((B, H), jnp.float32)
    outs = []
    for t in range(L):
        g = emb[:, t, :] @ params['w_ih_T'] + h @ params['w_hh_T'] + bias
        i_g = jax.nn.sigmoid(g[:, 0 * H:1 * H])
        f_g = jax.nn.sigmoid(g[:, 1 * H:2 * H])
        g_g = jnp.tanh(g[:, 2 * H:3 * H])
        o_g = jax.nn.sigmoid(g[:, 3 * H:4 * H])
        c = f_g * c + i_g * g_g
        h = o_g * jnp.tanh(c)
        outs.append(h)
    outputs = jnp.stack(outs, axis=1)
    a1 = jnp.tanh(outputs @ params['ws1_w_T'] + params['ws1_b'])
    scores = a1 @ params['ws2_w_T'] + params['ws2_b']
    att = jax.nn.softmax(scores, axis=1)
    attention = jnp.transpose(att, (0, 2, 1))
    sent = jnp.einsum('brl,blh->brh', attention, outputs)
    avg = jnp.sum(sent, axis=1) / R
    i2 = jax.nn.sigmoid(avg @ params['inter2_w_T'] + params['inter2_b'])
    logits = i2 @ params['final_w_T'] + params['final_b']
    return jax.nn.log_softmax(logits, axis=1), attention


def init_params(key, vocab_size, emb_dim, lstm_hid_dim, d_a, r, int_dim2,
                n_classes):
    ks = jax.random.split(key, 11)
    H = lstm_hid_dim

    def u(k, shape, fan_in):
        s = 1.0 / float(fan_in) ** 0.5
        return jax.random.uniform(k, shape, jnp.float32, -s, s)

    return {
        'embedding': jax.random.normal(ks[0], (vocab_size, emb_dim),
                                       jnp.float32),
        'w_ih_T':   u(ks[1], (emb_dim, 4 * H), H),
        'w_hh_T':   u(ks[2], (H, 4 * H), H),
        'b_ih':     u(ks[3], (1, 4 * H), H),
        'b_hh':     u(ks[4], (1, 4 * H), H),
        'ws1_w_T':  u(ks[5], (H, d_a), H),
        'ws1_b':    jnp.zeros((1, d_a), jnp.float32),   # ws1.bias.fill_(0)
        'ws2_w_T':  u(ks[6], (d_a, r), d_a),
        'ws2_b':    jnp.zeros((1, r), jnp.float32),     # ws2.bias.fill_(0)
        'inter2_w_T': u(ks[7], (H, int_dim2), H),
        'inter2_b':   u(ks[8], (1, int_dim2), H),
        'final_w_T':  u(ks[9], (int_dim2, n_classes), int_dim2),
        'final_b':    u(ks[10], (1, n_classes), int_dim2),
    }
    # TODO(synk): self.inter1 is defined in __init__ but never used in forward;
    # it is intentionally omitted.  The persistent self.hidden_state across
    # calls is modeled as the zero init_hidden() state each call.


if __name__ == "__main__":
    # small shapes consistent with the module
    B, L = 2, 8              # batch, max_len
    VOCAB, E = 50, 32        # vocab_size, emb_dim
    H, DA, R = 32, 16, 4     # lstm_hid_dim, d_a, attention heads
    D2, C = 2048, 5          # inter2 width (hardcoded 2048 in module), classes

    key = jax.random.PRNGKey(0)
    k_par, k_tok = jax.random.split(key)
    params = init_params(k_par, VOCAB, E, H, DA, R, D2, C)
    token_ids = jax.random.randint(k_tok, (B, L), 0, VOCAB, dtype=jnp.int32)

    logp, attention = structured_self_attention_forward(token_ids, params)
    logp, attention = jax.block_until_ready((logp, attention))

    ref_logp, ref_att = reference_forward(token_ids, params)
    assert logp.shape == (B, C) and attention.shape == (B, R, L)
    # bf16 matmul operands (f32 accumulation) -> compare at mixed-precision tol
    assert jnp.allclose(logp, ref_logp, atol=2e-2, rtol=2e-2)
    assert jnp.allclose(attention, ref_att, atol=2e-2, rtol=2e-2)

    print("KERNEL_OK")
</pallas_src>

<mosaic_0001>
module attributes {stable_mosaic.version = 11 : i64} {
  func.func @ssa_kernel(%arg0: i32, %arg1: memref<8x8x32xbf16, #tpu.memory_space<vmem>>, %arg2: memref<32x128xbf16, #tpu.memory_space<vmem>>, %arg3: memref<1x128xf32, #tpu.memory_space<vmem>>, %arg4: memref<32x128xbf16, #tpu.memory_space<vmem>>, %arg5: memref<1x128xf32, #tpu.memory_space<vmem>>, %arg6: memref<32x16xbf16, #tpu.memory_space<vmem>>, %arg7: memref<1x16xf32, #tpu.memory_space<vmem>>, %arg8: memref<16x4xbf16, #tpu.memory_space<vmem>>, %arg9: memref<1x4xf32, #tpu.memory_space<vmem>>, %arg10: memref<32x2048xbf16, #tpu.memory_space<vmem>>, %arg11: memref<1x2048xf32, #tpu.memory_space<vmem>>, %arg12: memref<2048x5xbf16, #tpu.memory_space<vmem>>, %arg13: memref<1x5xf32, #tpu.memory_space<vmem>>, %arg14: memref<8x5xf32, #tpu.memory_space<vmem>>, %arg15: memref<8x4x8xf32, #tpu.memory_space<vmem>>, %arg16: memref<8x8x128xf32, #tpu.memory_space<vmem>>, %arg17: memref<8x8x32xbf16, #tpu.memory_space<vmem>>) attributes {dimension_semantics = [#tpu.dimension_semantics<parallel>], iteration_bounds = array<i64: 1>, scalar_prefetch = 0 : i64, scratch_operands = 2 : i64, tpu.core_type = #tpu.core_type<tc>, window_params = [{transform_indices = @transform_0, window_bounds = array<i64: 8, 8, 32>}, {pipeline_mode = #tpu.pipeline_mode<synchronous>, transform_indices = @transform_1, window_bounds = array<i64: 32, 128>}, {pipeline_mode = #tpu.pipeline_mode<synchronous>, transform_indices = @transform_2, window_bounds = array<i64: 1, 128>}, {pipeline_mode = #tpu.pipeline_mode<synchronous>, transform_indices = @transform_3, window_bounds = array<i64: 32, 128>}, {pipeline_mode = #tpu.pipeline_mode<synchronous>, transform_indices = @transform_4, window_bounds = array<i64: 1, 128>}, {pipeline_mode = #tpu.pipeline_mode<synchronous>, transform_indices = @transform_5, window_bounds = array<i64: 32, 16>}, {pipeline_mode = #tpu.pipeline_mode<synchronous>, transform_indices = @transform_6, window_bounds = array<i64: 1, 16>}, {pipeline_mode = #tpu.pipeline_mode<synchronous>, transform_indices = @transform_7, window_bounds = array<i64: 16, 4>}, {pipeline_mode = #tpu.pipeline_mode<synchronous>, transform_indices = @transform_8, window_bounds = array<i64: 1, 4>}, {pipeline_mode = #tpu.pipeline_mode<synchronous>, transform_indices = @transform_9, window_bounds = array<i64: 32, 2048>}, {pipeline_mode = #tpu.pipeline_mode<synchronous>, transform_indices = @transform_10, window_bounds = array<i64: 1, 2048>}, {pipeline_mode = #tpu.pipeline_mode<synchronous>, transform_indices = @transform_11, window_bounds = array<i64: 2048, 5>}, {pipeline_mode = #tpu.pipeline_mode<synchronous>, transform_indices = @transform_12, window_bounds = array<i64: 1, 5>}, {transform_indices = @transform_13, window_bounds = array<i64: 8, 5>}, {transform_indices = @transform_14, window_bounds = array<i64: 8, 4, 8>}]} {
    %0 = tpu.iota {dimensions = array<i32: 1>} : vector<1x128xi32>
    %c64_i32 = arith.constant 64 : i32
    %1 = vector.broadcast %c64_i32 : i32 to vector<1x128xi32>
    %2 = arith.cmpi sge, %0, %1 : vector<1x128xi32>
    %c96_i32 = arith.constant 96 : i32
    %3 = vector.broadcast %c96_i32 : i32 to vector<1x128xi32>
    %4 = arith.cmpi slt, %0, %3 : vector<1x128xi32>
    %5 = arith.andi %2, %4 : vector<1x128xi1>
    %cst = arith.constant 2.000000e+00 : f32
    %cst_0 = arith.constant 1.000000e+00 : f32
    %6 = vector.broadcast %cst : f32 to vector<1x128xf32>
    %7 = vector.broadcast %cst_0 : f32 to vector<1x128xf32>
    %8 = arith.select %5, %6, %7 : vector<1x128xi1>, vector<1x128xf32>
    %cst_1 = arith.constant 1.000000e+00 : f32
    %cst_2 = arith.constant 0.000000e+00 : f32
    %9 = vector.broadcast %cst_1 : f32 to vector<1x128xf32>
    %10 = vector.broadcast %cst_2 : f32 to vector<1x128xf32>
    %11 = arith.select %5, %9, %10 : vector<1x128xi1>, vector<1x128xf32>
    %12 = vector.shape_cast %8 : vector<1x128xf32> to vector<1x128xf32>
    %13 = vector.broadcast %12 : vector<1x128xf32> to vector<8x128xf32>
    %14 = vector.shape_cast %11 : vector<1x128xf32> to vector<1x128xf32>
    %15 = vector.broadcast %14 : vector<1x128xf32> to vector<8x128xf32>
    %c0 = arith.constant 0 : index
    %c0_3 = arith.constant 0 : index
    %16 = vector.load %arg4[%c0, %c0_3] : memref<32x128xbf16, #tpu.memory_space<vmem>>, vector<32x128xbf16>
    %17 = arith.truncf %8 : vector<1x128xf32> to vector<1x128xbf16>
    %18 = vector.broadcast %17 : vector<1x128xbf16> to vector<32x128xbf16>
    %19 = arith.mulf %16, %18 : vector<32x128xbf16>
    %c0_4 = arith.constant 0 : index
    %c0_5 = arith.constant 0 : index
    %20 = vector.load %arg3[%c0_4, %c0_5] : memref<1x128xf32, #tpu.memory_space<vmem>>, vector<1x128xf32>
    %c0_6 = arith.constant 0 : index
    %c0_7 = arith.constant 0 : index
    %21 = vector.load %arg5[%c0_6, %c0_7] : memref<1x128xf32, #tpu.memory_space<vmem>>, vector<1x128xf32>
    %22 = arith.addf %20, %21 : vector<1x128xf32>
    %23 = arith.mulf %22, %8 : vector<1x128xf32>
    %c0_8 = arith.constant 0 : index
    %c0_9 = arith.constant 0 : index
    %c0_10 = arith.constant 0 : index
    %24 = vector.load %arg1[%c0_8, %c0_9, %c0_10] : memref<8x8x32xbf16, #tpu.memory_space<vmem>>, vector<8x8x32xbf16>
    %25 = vector.shape_cast %24 : vector<8x8x32xbf16> to vector<64x32xbf16>
    %c0_11 = arith.constant 0 : index
    %c0_12 = arith.constant 0 : index
    %26 = vector.load %arg2[%c0_11, %c0_12] : memref<32x128xbf16, #tpu.memory_space<vmem>>, vector<32x128xbf16>
    %cst_13 = arith.constant dense<0.000000e+00> : vector<64x128xf32>
    %27 = tpu.matmul %25, %26, %cst_13 {dimension_numbers = #tpu.dot_dimension_numbers<[1], [0], [0], [1], [0, 0, 1, 1], [], []>} : vector<64x32xbf16>, vector<32x128xbf16>, vector<64x128xf32> -> vector<64x128xf32>
    %28 = vector.broadcast %8 : vector<1x128xf32> to vector<64x128xf32>
    %29 = arith.mulf %27, %28 : vector<64x128xf32>
    %30 = vector.broadcast %23 : vector<1x128xf32> to vector<64x128xf32>
    %31 = arith.addf %29, %30 : vector<64x128xf32>
    %32 = vector.shape_cast %31 : vector<64x128xf32> to vector<8x8x128xf32>
    %c0_14 = arith.constant 0 : index
    %c0_15 = arith.constant 0 : index
    %c0_16 = arith.constant 0 : index
    %33 = vector.load %arg16[%c0_14, %c0_15, %c0_16] : memref<8x8x128xf32, #tpu.memory_space<vmem>>, vector<8x8x128xf32>
    tpu.vector_store %arg16[%c0_14, %c0_15, %c0_16], %32 {strides = array<i32>} : memref<8x8x128xf32, #tpu.memory_space<vmem>>, vector<8x8x128xf32>,
    %cst_17 = arith.constant 0.000000e+00 : f32
    %34 = vector.broadcast %cst_17 : f32 to vector<8x32xf32>
    %cst_18 = arith.constant 0.000000e+00 : f32
    %35 = vector.broadcast %cst_18 : f32 to vector<8x32xf32>
    %c0_19 = arith.constant 0 : index
    %c0_20 = arith.constant 0 : index
    %c0_21 = arith.constant 0 : index
    %36 = vector.load %arg16[%c0_19, %c0_20, %c0_21] : memref<8x8x128xf32, #tpu.memory_space<vmem>>, vector<1x8x128xf32>
    %37 = vector.shape_cast %36 : vector<1x8x128xf32> to vector<8x128xf32>
    %38 = arith.truncf %34 : vector<8x32xf32> to vector<8x32xbf16>
    %cst_22 = arith.constant dense<0.000000e+00> : vector<8x128xf32>
    %39 = tpu.matmul %38, %19, %cst_22 {dimension_numbers = #tpu.dot_dimension_numbers<[1], [0], [0], [1], [0, 0, 1, 1], [], []>} : vector<8x32xbf16>, vector<32x128xbf16>, vector<8x128xf32> -> vector<8x128xf32>
    %40 = arith.addf %37, %39 : vector<8x128xf32>
    %41 = arith.negf %40 : vector<8x128xf32>
    %42 = math.exp %41 : vector<8x128xf32>
    %cst_23 = arith.constant 1.000000e+00 : f32
    %43 = vector.broadcast %cst_23 : f32 to vector<8x128xf32>
    %44 = arith.addf %43, %42 : vector<8x128xf32>
    %45 = arith.divf %43, %44 : vector<8x128xf32>
    %46 = arith.mulf %45, %13 : vector<8x128xf32>
    %47 = arith.subf %46, %15 : vector<8x128xf32>
    %48 = vector.extract_strided_slice %47 {offsets = [0, 0], sizes = [8, 32], strides = [1, 1]} : vector<8x128xf32> to vector<8x32xf32>
    %49 = vector.extract_strided_slice %47 {offsets = [0, 32], sizes = [8, 32], strides = [1, 1]} : vector<8x128xf32> to vector<8x32xf32>
    %50 = vector.extract_strided_slice %47 {offsets = [0, 64], sizes = [8, 32], strides = [1, 1]} : vector<8x128xf32> to vector<8x32xf32>
    %51 = vector.extract_strided_slice %47 {offsets = [0, 96], sizes = [8, 32], strides = [1, 1]} : vector<8x128xf32> to vector<8x32xf32>
    %52 = arith.mulf %49, %35 : vector<8x32xf32>
    %53 = arith.mulf %48, %50 : vector<8x32xf32>
    %54 = arith.addf %52, %53 : vector<8x32xf32>
    %55 = math.tanh %54 : vector<8x32xf32>
    %56 = arith.mulf %51, %55 : vector<8x32xf32>
    %57 = arith.truncf %56 : vector<8x32xf32> to vector<8x32xbf16>
    %c0_24 = arith.constant 0 : index
    %c0_25 = arith.constant 0 : index
    %c0_26 = arith.constant 0 : index
    %58 = vector.load %arg17[%c0_24, %c0_25, %c0_26] : memref<8x8x32xbf16, #tpu.memory_space<vmem>>, vector<1x8x32xbf16>
    %59 = vector.shape_cast %58 : vector<1x8x32xbf16> to vector<8x32xbf16>
    %60 = vector.shape_cast %57 : vector<8x32xbf16> to vector<1x8x32xbf16>
    tpu.vector_store %arg17[%c0_24, %c0_25, %c0_26], %60 {strides = array<i32>} : memref<8x8x32xbf16, #tpu.memory_space<vmem>>, vector<1x8x32xbf16>,
    %c1 = arith.constant 1 : index
    %c0_27 = arith.constant 0 : index
    %c0_28 = arith.constant 0 : index
    %61 = vector.load %arg16[%c1, %c0_27, %c0_28] : memref<8x8x128xf32, #tpu.memory_space<vmem>>, vector<1x8x128xf32>
    %62 = vector.shape_cast %61 : vector<1x8x128xf32> to vector<8x128xf32>
    %63 = arith.truncf %56 : vector<8x32xf32> to vector<8x32xbf16>
    %cst_29 = arith.constant dense<0.000000e+00> : vector<8x128xf32>
    %64 = tpu.matmul %63, %19, %cst_29 {dimension_numbers = #tpu.dot_dimension_numbers<[1], [0], [0], [1], [0, 0, 1, 1], [], []>} : vector<8x32xbf16>, vector<32x128xbf16>, vector<8x128xf32> -> vector<8x128xf32>
    %65 = arith.addf %62, %64 : vector<8x128xf32>
    %66 = arith.negf %65 : vector<8x128xf32>
    %67 = math.exp %66 : vector<8x128xf32>
    %cst_30 = arith.constant 1.000000e+00 : f32
    %68 = vector.broadcast %cst_30 : f32 to vector<8x128xf32>
    %69 = arith.addf %68, %67 : vector<8x128xf32>
    %70 = arith.divf %68, %69 : vector<8x128xf32>
    %71 = arith.mulf %70, %13 : vector<8x128xf32>
    %72 = arith.subf %71, %15 : vector<8x128xf32>
    %73 = vector.extract_strided_slice %72 {offsets = [0, 0], sizes = [8, 32], strides = [1, 1]} : vector<8x128xf32> to vector<8x32xf32>
    %74 = vector.extract_strided_slice %72 {offsets = [0, 32], sizes = [8, 32], strides = [1, 1]} : vector<8x128xf32> to vector<8x32xf32>
    %75 = vector.extract_strided_slice %72 {offsets = [0, 64], sizes = [8, 32], strides = [1, 1]} : vector<8x128xf32> to vector<8x32xf32>
    %76 = vector.extract_strided_slice %72 {offsets = [0, 96], sizes = [8, 32], strides = [1, 1]} : vector<8x128xf32> to vector<8x32xf32>
    %77 = arith.mulf %74, %54 : vector<8x32xf32>
    %78 = arith.mulf %73, %75 : vector<8x32xf32>
    %79 = arith.addf %77, %78 : vector<8x32xf32>
    %80 = math.tanh %79 : vector<8x32xf32>
    %81 = arith.mulf %76, %80 : vector<8x32xf32>
    %82 = arith.truncf %81 : vector<8x32xf32> to vector<8x32xbf16>
    %c1_31 = arith.constant 1 : index
    %c0_32 = arith.constant 0 : index
    %c0_33 = arith.constant 0 : index
    %83 = vector.load %arg17[%c1_31, %c0_32, %c0_33] : memref<8x8x32xbf16, #tpu.memory_space<vmem>>, vector<1x8x32xbf16>
    %84 = vector.shape_cast %83 : vector<1x8x32xbf16> to vector<8x32xbf16>
    %85 = vector.shape_cast %82 : vector<8x32xbf16> to vector<1x8x32xbf16>
    tpu.vector_store %arg17[%c1_31, %c0_32, %c0_33], %85 {strides = array<i32>} : memref<8x8x32xbf16, #tpu.memory_space<vmem>>, vector<1x8x32xbf16>,
    %c2 = arith.constant 2 : index
    %c0_34 = arith.constant 0 : index
    %c0_35 = arith.constant 0 : index
    %86 = vector.load %arg16[%c2, %c0_34, %c0_35] : memref<8x8x128xf32, #tpu.memory_space<vmem>>, vector<1x8x128xf32>
    %87 = vector.shape_cast %86 : vector<1x8x128xf32> to vector<8x128xf32>
    %88 = arith.truncf %81 : vector<8x32xf32> to vector<8x32xbf16>
    %cst_36 = arith.constant dense<0.000000e+00> : vector<8x128xf32>
    %89 = tpu.matmul %88, %19, %cst_36 {dimension_numbers = #tpu.dot_dimension_numbers<[1], [0], [0], [1], [0, 0, 1, 1], [], []>} : vector<8x32xbf16>, vector<32x128xbf16>, vector<8x128xf32> -> vector<8x128xf32>
    %90 = arith.addf %87, %89 : vector<8x128xf32>
    %91 = arith.negf %90 : vector<8x128xf32>
    %92 = math.exp %91 : vector<8x128xf32>
    %cst_37 = arith.constant 1.000000e+00 : f32
    %93 = vector.broadcast %cst_37 : f32 to vector<8x128xf32>
    %94 = arith.addf %93, %92 : vector<8x128xf32>
    %95 = arith.divf %93, %94 : vector<8x128xf32>
    %96 = arith.mulf %95, %13 : vector<8x128xf32>
    %97 = arith.subf %96, %15 : vector<8x128xf32>
    %98 = vector.extract_strided_slice %97 {offsets = [0, 0], sizes = [8, 32], strides = [1, 1]} : vector<8x128xf32> to vector<8x32xf32>
    %99 = vector.extract_strided_slice %97 {offsets = [0, 32], sizes = [8, 32], strides = [1, 1]} : vector<8x128xf32> to vector<8x32xf32>
    %100 = vector.extract_strided_slice %97 {offsets = [0, 64], sizes = [8, 32], strides = [1, 1]} : vector<8x128xf32> to vector<8x32xf32>
    %101 = vector.extract_strided_slice %97 {offsets = [0, 96], sizes = [8, 32], strides = [1, 1]} : vector<8x128xf32> to vector<8x32xf32>
    %102 = arith.mulf %99, %79 : vector<8x32xf32>
    %103 = arith.mulf %98, %100 : vector<8x32xf32>
    %104 = arith.addf %102, %103 : vector<8x32xf32>
    %105 = math.tanh %104 : vector<8x32xf32>
    %106 = arith.mulf %101, %105 : vector<8x32xf32>
    %107 = arith.truncf %106 : vector<8x32xf32> to vector<8x32xbf16>
    %c2_38 = arith.constant 2 : index
    %c0_39 = arith.constant 0 : index
    %c0_40 = arith.constant 0 : index
    %108 = vector.load %arg17[%c2_38, %c0_39, %c0_40] : memref<8x8x32xbf16, #tpu.memory_space<vmem>>, vector<1x8x32xbf16>
    %109 = vector.shape_cast %108 : vector<1x8x32xbf16> to vector<8x32xbf16>
    %110 = vector.shape_cast %107 : vector<8x32xbf16> to vector<1x8x32xbf16>
    tpu.vector_store %arg17[%c2_38, %c0_39, %c0_40], %110 {strides = array<i32>} : memref<8x8x32xbf16, #tpu.memory_space<vmem>>, vector<1x8x32xbf16>,
    %c3 = arith.constant 3 : index
    %c0_41 = arith.constant 0 : index
    %c0_42 = arith.constant 0 : index
    %111 = vector.load %arg16[%c3, %c0_41, %c0_42] : memref<8x8x128xf32, #tpu.memory_space<vmem>>, vector<1x8x128xf32>
    %112 = vector.shape_cast %111 : vector<1x8x128xf32> to vector<8x128xf32>
    %113 = arith.truncf %106 : vector<8x32xf32> to vector<8x32xbf16>
    %cst_43 = arith.constant dense<0.000000e+00> : vector<8x128xf32>
    %114 = tpu.matmul %113, %19, %cst_43 {dimension_numbers = #tpu.dot_dimension_numbers<[1], [0], [0], [1], [0, 0, 1, 1], [], []>} : vector<8x32xbf16>, vector<32x128xbf16>, vector<8x128xf32> -> vector<8x128xf32>
    %115 = arith.addf %112, %114 : vector<8x128xf32>
    %116 = arith.negf %115 : vector<8x128xf32>
    %117 = math.exp %116 : vector<8x128xf32>
    %cst_44 = arith.constant 1.000000e+00 : f32
    %118 = vector.broadcast %cst_44 : f32 to vector<8x128xf32>
    %119 = arith.addf %118, %117 : vector<8x128xf32>
    %120 = arith.divf %118, %119 : vector<8x128xf32>
    %121 = arith.mulf %120, %13 : vector<8x128xf32>
    %122 = arith.subf %121, %15 : vector<8x128xf32>
    %123 = vector.extract_strided_slice %122 {offsets = [0, 0], sizes = [8, 32], strides = [1, 1]} : vector<8x128xf32> to vector<8x32xf32>
    %124 = vector.extract_strided_slice %122 {offsets = [0, 32], sizes = [8, 32], strides = [1, 1]} : vector<8x128xf32> to vector<8x32xf32>
    %125 = vector.extract_strided_slice %122 {offsets = [0, 64], sizes = [8, 32], strides = [1, 1]} : vector<8x128xf32> to vector<8x32xf32>
    %126 = vector.extract_strided_slice %122 {offsets = [0, 96], sizes = [8, 32], strides = [1, 1]} : vector<8x128xf32> to vector<8x32xf32>
    %127 = arith.mulf %124, %104 : vector<8x32xf32>
    %128 = arith.mulf %123, %125 : vector<8x32xf32>
    %129 = arith.addf %127, %128 : vector<8x32xf32>
    %130 = math.tanh %129 : vector<8x32xf32>
    %131 = arith.mulf %126, %130 : vector<8x32xf32>
    %132 = arith.truncf %131 : vector<8x32xf32> to vector<8x32xbf16>
    %c3_45 = arith.constant 3 : index
    %c0_46 = arith.constant 0 : index
    %c0_47 = arith.constant 0 : index
    %133 = vector.load %arg17[%c3_45, %c0_46, %c0_47] : memref<8x8x32xbf16, #tpu.memory_space<vmem>>, vector<1x8x32xbf16>
    %134 = vector.shape_cast %133 : vector<1x8x32xbf16> to vector<8x32xbf16>
    %135 = vector.shape_cast %132 : vector<8x32xbf16> to vector<1x8x32xbf16>
    tpu.vector_store %arg17[%c3_45, %c0_46, %c0_47], %135 {strides = array<i32>} : memref<8x8x32xbf16, #tpu.memory_space<vmem>>, vector<1x8x32xbf16>,
    %c4 = arith.constant 4 : index
    %c0_48 = arith.constant 0 : index
    %c0_49 = arith.constant 0 : index
    %136 = vector.load %arg16[%c4, %c0_48, %c0_49] : memref<8x8x128xf32, #tpu.memory_space<vmem>>, vector<1x8x128xf32>
    %137 = vector.shape_cast %136 : vector<1x8x128xf32> to vector<8x128xf32>
    %138 = arith.truncf %131 : vector<8x32xf32> to vector<8x32xbf16>
    %cst_50 = arith.constant dense<0.000000e+00> : vector<8x128xf32>
    %139 = tpu.matmul %138, %19, %cst_50 {dimension_numbers = #tpu.dot_dimension_numbers<[1], [0], [0], [1], [0, 0, 1, 1], [], []>} : vector<8x32xbf16>, vector<32x128xbf16>, vector<8x128xf32> -> vector<8x128xf32>
    %140 = arith.addf %137, %139 : vector<8x128xf32>
    %141 = arith.negf %140 : vector<8x128xf32>
    %142 = math.exp %141 : vector<8x128xf32>
    %cst_51 = arith.constant 1.000000e+00 : f32
    %143 = vector.broadcast %cst_51 : f32 to vector<8x128xf32>
    %144 = arith.addf %143, %142 : vector<8x128xf32>
    %145 = arith.divf %143, %144 : vector<8x128xf32>
    %146 = arith.mulf %145, %13 : vector<8x128xf32>
    %147 = arith.subf %146, %15 : vector<8x128xf32>
    %148 = vector.extract_strided_slice %147 {offsets = [0, 0], sizes = [8, 32], strides = [1, 1]} : vector<8x128xf32> to vector<8x32xf32>
    %149 = vector.extract_strided_slice %147 {offsets = [0, 32], sizes = [8, 32], strides = [1, 1]} : vector<8x128xf32> to vector<8x32xf32>
    %150 = vector.extract_strided_slice %147 {offsets = [0, 64], sizes = [8, 32], strides = [1, 1]} : vector<8x128xf32> to vector<8x32xf32>
    %151 = vector.extract_strided_slice %147 {offsets = [0, 96], sizes = [8, 32], strides = [1, 1]} : vector<8x128xf32> to vector<8x32xf32>
    %152 = arith.mulf %149, %129 : vector<8x32xf32>
    %153 = arith.mulf %148, %150 : vector<8x32xf32>
    %154 = arith.addf %152, %153 : vector<8x32xf32>
    %155 = math.tanh %154 : vector<8x32xf32>
    %156 = arith.mulf %151, %155 : vector<8x32xf32>
    %157 = arith.truncf %156 : vector<8x32xf32> to vector<8x32xbf16>
    %c4_52 = arith.constant 4 : index
    %c0_53 = arith.constant 0 : index
    %c0_54 = arith.constant 0 : index
    %158 = vector.load %arg17[%c4_52, %c0_53, %c0_54] : memref<8x8x32xbf16, #tpu.memory_space<vmem>>, vector<1x8x32xbf16>
    %159 = vector.shape_cast %158 : vector<1x8x32xbf16> to vector<8x32xbf16>
    %160 = vector.shape_cast %157 : vector<8x32xbf16> to vector<1x8x32xbf16>
    tpu.vector_store %arg17[%c4_52, %c0_53, %c0_54], %160 {strides = array<i32>} : memref<8x8x32xbf16, #tpu.memory_space<vmem>>, vector<1x8x32xbf16>,
    %c5 = arith.constant 5 : index
    %c0_55 = arith.constant 0 : index
    %c0_56 = arith.constant 0 : index
    %161 = vector.load %arg16[%c5, %c0_55, %c0_56] : memref<8x8x128xf32, #tpu.memory_space<vmem>>, vector<1x8x128xf32>
    %162 = vector.shape_cast %161 : vector<1x8x128xf32> to vector<8x128xf32>
    %163 = arith.truncf %156 : vector<8x32xf32> to vector<8x32xbf16>
    %cst_57 = arith.constant dense<0.000000e+00> : vector<8x128xf32>
    %164 = tpu.matmul %163, %19, %cst_57 {dimension_numbers = #tpu.dot_dimension_numbers<[1], [0], [0], [1], [0, 0, 1, 1], [], []>} : vector<8x32xbf16>, vector<32x128xbf16>, vector<8x128xf32> -> vector<8x128xf32>
    %165 = arith.addf %162, %164 : vector<8x128xf32>
    %166 = arith.negf %165 : vector<8x128xf32>
    %167 = math.exp %166 : vector<8x128xf32>
    %cst_58 = arith.constant 1.000000e+00 : f32
    %168 = vector.broadcast %cst_58 : f32 to vector<8x128xf32>
    %169 = arith.addf %168, %167 : vector<8x128xf32>
    %170 = arith.divf %168, %169 : vector<8x128xf32>
    %171 = arith.mulf %170, %13 : vector<8x128xf32>
    %172 = arith.subf %171, %15 : vector<8x128xf32>
    %173 = vector.extract_strided_slice %172 {offsets = [0, 0], sizes = [8, 32], strides = [1, 1]} : vector<8x128xf32> to vector<8x32xf32>
    %174 = vector.extract_strided_slice %172 {offsets = [0, 32], sizes = [8, 32], strides = [1, 1]} : vector<8x128xf32> to vector<8x32xf32>
    %175 = vector.extract_strided_slice %172 {offsets = [0, 64], sizes = [8, 32], strides = [1, 1]} : vector<8x128xf32> to vector<8x32xf32>
    %176 = vector.extract_strided_slice %172 {offsets = [0, 96], sizes = [8, 32], strides = [1, 1]} : vector<8x128xf32> to vector<8x32xf32>
    %177 = arith.mulf %174, %154 : vector<8x32xf32>
    %178 = arith.mulf %173, %175 : vector<8x32xf32>
    %179 = arith.addf %177, %178 : vector<8x32xf32>
    %180 = math.tanh %179 : vector<8x32xf32>
    %181 = arith.mulf %176, %180 : vector<8x32xf32>
    %182 = arith.truncf %181 : vector<8x32xf32> to vector<8x32xbf16>
    %c5_59 = arith.constant 5 : index
    %c0_60 = arith.constant 0 : index
    %c0_61 = arith.constant 0 : index
    %183 = vector.load %arg17[%c5_59, %c0_60, %c0_61] : memref<8x8x32xbf16, #tpu.memory_space<vmem>>, vector<1x8x32xbf16>
    %184 = vector.shape_cast %183 : vector<1x8x32xbf16> to vector<8x32xbf16>
    %185 = vector.shape_cast %182 : vector<8x32xbf16> to vector<1x8x32xbf16>
    tpu.vector_store %arg17[%c5_59, %c0_60, %c0_61], %185 {strides = array<i32>} : memref<8x8x32xbf16, #tpu.memory_space<vmem>>, vector<1x8x32xbf16>,
    %c6 = arith.constant 6 : index
    %c0_62 = arith.constant 0 : index
    %c0_63 = arith.constant 0 : index
    %186 = vector.load %arg16[%c6, %c0_62, %c0_63] : memref<8x8x128xf32, #tpu.memory_space<vmem>>, vector<1x8x128xf32>
    %187 = vector.shape_cast %186 : vector<1x8x128xf32> to vector<8x128xf32>
    %188 = arith.truncf %181 : vector<8x32xf32> to vector<8x32xbf16>
    %cst_64 = arith.constant dense<0.000000e+00> : vector<8x128xf32>
    %189 = tpu.matmul %188, %19, %cst_64 {dimension_numbers = #tpu.dot_dimension_numbers<[1], [0], [0], [1], [0, 0, 1, 1], [], []>} : vector<8x32xbf16>, vector<32x128xbf16>, vector<8x128xf32> -> vector<8x128xf32>
    %190 = arith.addf %187, %189 : vector<8x128xf32>
    %191 = arith.negf %190 : vector<8x128xf32>
    %192 = math.exp %191 : vector<8x128xf32>
    %cst_65 = arith.constant 1.000000e+00 : f32
    %193 = vector.broadcast %cst_65 : f32 to vector<8x128xf32>
    %194 = arith.addf %193, %192 : vector<8x128xf32>
    %195 = arith.divf %193, %194 : vector<8x128xf32>
    %196 = arith.mulf %195, %13 : vector<8x128xf32>
    %197 = arith.subf %196, %15 : vector<8x128xf32>
    %198 = vector.extract_strided_slice %197 {offsets = [0, 0], sizes = [8, 32], strides = [1, 1]} : vector<8x128xf32> to vector<8x32xf32>
    %199 = vector.extract_strided_slice %197 {offsets = [0, 32], sizes = [8, 32], strides = [1, 1]} : vector<8x128xf32> to vector<8x32xf32>
    %200 = vector.extract_strided_slice %197 {offsets = [0, 64], sizes = [8, 32], strides = [1, 1]} : vector<8x128xf32> to vector<8x32xf32>
    %201 = vector.extract_strided_slice %197 {offsets = [0, 96], sizes = [8, 32], strides = [1, 1]} : vector<8x128xf32> to vector<8x32xf32>
    %202 = arith.mulf %199, %179 : vector<8x32xf32>
    %203 = arith.mulf %198, %200 : vector<8x32xf32>
    %204 = arith.addf %202, %203 : vector<8x32xf32>
    %205 = math.tanh %204 : vector<8x32xf32>
    %206 = arith.mulf %201, %205 : vector<8x32xf32>
    %207 = arith.truncf %206 : vector<8x32xf32> to vector<8x32xbf16>
    %c6_66 = arith.constant 6 : index
    %c0_67 = arith.constant 0 : index
    %c0_68 = arith.constant 0 : index
    %208 = vector.load %arg17[%c6_66, %c0_67, %c0_68] : memref<8x8x32xbf16, #tpu.memory_space<vmem>>, vector<1x8x32xbf16>
    %209 = vector.shape_cast %208 : vector<1x8x32xbf16> to vector<8x32xbf16>
    %210 = vector.shape_cast %207 : vector<8x32xbf16> to vector<1x8x32xbf16>
    tpu.vector_store %arg17[%c6_66, %c0_67, %c0_68], %210 {strides = array<i32>} : memref<8x8x32xbf16, #tpu.memory_space<vmem>>, vector<1x8x32xbf16>,
    %c7 = arith.constant 7 : index
    %c0_69 = arith.constant 0 : index
    %c0_70 = arith.constant 0 : index
    %211 = vector.load %arg16[%c7, %c0_69, %c0_70] : memref<8x8x128xf32, #tpu.memory_space<vmem>>, vector<1x8x128xf32>
    %212 = vector.shape_cast %211 : vector<1x8x128xf32> to vector<8x128xf32>
    %213 = arith.truncf %206 : vector<8x32xf32> to vector<8x32xbf16>
    %cst_71 = arith.constant dense<0.000000e+00> : vector<8x128xf32>
    %214 = tpu.matmul %213, %19, %cst_71 {dimension_numbers = #tpu.dot_dimension_numbers<[1], [0], [0], [1], [0, 0, 1, 1], [], []>} : vector<8x32xbf16>, vector<32x128xbf16>, vector<8x128xf32> -> vector<8x128xf32>
    %215 = arith.addf %212, %214 : vector<8x128xf32>
    %216 = arith.negf %215 : vector<8x128xf32>
    %217 = math.exp %216 : vector<8x128xf32>
    %cst_72 = arith.constant 1.000000e+00 : f32
    %218 = vector.broadcast %cst_72 : f32 to vector<8x128xf32>
    %219 = arith.addf %218, %217 : vector<8x128xf32>
    %220 = arith.divf %218, %219 : vector<8x128xf32>
    %221 = arith.mulf %220, %13 : vector<8x128xf32>
    %222 = arith.subf %221, %15 : vector<8x128xf32>
    %223 = vector.extract_strided_slice %222 {offsets = [0, 0], sizes = [8, 32], strides = [1, 1]} : vector<8x128xf32> to vector<8x32xf32>
    %224 = vector.extract_strided_slice %222 {offsets = [0, 32], sizes = [8, 32], strides = [1, 1]} : vector<8x128xf32> to vector<8x32xf32>
    %225 = vector.extract_strided_slice %222 {offsets = [0, 64], sizes = [8, 32], strides = [1, 1]} : vector<8x128xf32> to vector<8x32xf32>
    %226 = vector.extract_strided_slice %222 {offsets = [0, 96], sizes = [8, 32], strides = [1, 1]} : vector<8x128xf32> to vector<8x32xf32>
    %227 = arith.mulf %224, %204 : vector<8x32xf32>
    %228 = arith.mulf %223, %225 : vector<8x32xf32>
    %229 = arith.addf %227, %228 : vector<8x32xf32>
    %230 = math.tanh %229 : vector<8x32xf32>
    %231 = arith.mulf %226, %230 : vector<8x32xf32>
    %232 = arith.truncf %231 : vector<8x32xf32> to vector<8x32xbf16>
    %c7_73 = arith.constant 7 : index
    %c0_74 = arith.constant 0 : index
    %c0_75 = arith.constant 0 : index
    %233 = vector.load %arg17[%c7_73, %c0_74, %c0_75] : memref<8x8x32xbf16, #tpu.memory_space<vmem>>, vector<1x8x32xbf16>
    %234 = vector.shape_cast %233 : vector<1x8x32xbf16> to vector<8x32xbf16>
    %235 = vector.shape_cast %232 : vector<8x32xbf16> to vector<1x8x32xbf16>
    tpu.vector_store %arg17[%c7_73, %c0_74, %c0_75], %235 {strides = array<i32>} : memref<8x8x32xbf16, #tpu.memory_space<vmem>>, vector<1x8x32xbf16>,
    %c0_76 = arith.constant 0 : index
    %c0_77 = arith.constant 0 : index
    %c0_78 = arith.constant 0 : index
    %236 = vector.load %arg17[%c0_76, %c0_77, %c0_78] : memref<8x8x32xbf16, #tpu.memory_space<vmem>>, vector<8x8x32xbf16>
    %237 = vector.shape_cast %236 : vector<8x8x32xbf16> to vector<64x32xbf16>
    %c0_79 = arith.constant 0 : index
    %c0_80 = arith.constant 0 : index
    %238 = vector.load %arg6[%c0_79, %c0_80] : memref<32x16xbf16, #tpu.memory_space<vmem>>, vector<32x16xbf16>
    %cst_81 = arith.constant dense<0.000000e+00> : vector<64x16xf32>
    %239 = tpu.matmul %237, %238, %cst_81 {dimension_numbers = #tpu.dot_dimension_numbers<[1], [0], [0], [1], [0, 0, 1, 1], [], []>} : vector<64x32xbf16>, vector<32x16xbf16>, vector<64x16xf32> -> vector<64x16xf32>
    %c0_82 = arith.constant 0 : index
    %c0_83 = arith.constant 0 : index
    %240 = vector.load %arg7[%c0_82, %c0_83] : memref<1x16xf32, #tpu.memory_space<vmem>>, vector<1x16xf32>
    %241 = vector.broadcast %240 : vector<1x16xf32> to vector<64x16xf32>
    %242 = arith.addf %239, %241 : vector<64x16xf32>
    %243 = math.tanh %242 : vector<64x16xf32>
    %244 = arith.truncf %243 : vector<64x16xf32> to vector<64x16xbf16>
    %c0_84 = arith.constant 0 : index
    %c0_85 = arith.constant 0 : index
    %245 = vector.load %arg8[%c0_84, %c0_85] : memref<16x4xbf16, #tpu.memory_space<vmem>>, vector<16x4xbf16>
    %cst_86 = arith.constant dense<0.000000e+00> : vector<64x4xf32>
    %246 = tpu.matmul %244, %245, %cst_86 {dimension_numbers = #tpu.dot_dimension_numbers<[1], [0], [0], [1], [0, 0, 1, 1], [], []>} : vector<64x16xbf16>, vector<16x4xbf16>, vector<64x4xf32> -> vector<64x4xf32>
    %c0_87 = arith.constant 0 : index
    %c0_88 = arith.constant 0 : index
    %247 = vector.load %arg9[%c0_87, %c0_88] : memref<1x4xf32, #tpu.memory_space<vmem>>, vector<1x4xf32>
    %248 = vector.broadcast %247 : vector<1x4xf32> to vector<64x4xf32>
    %249 = arith.addf %246, %248 : vector<64x4xf32>
    %250 = vector.shape_cast %249 : vector<64x4xf32> to vector<8x8x4xf32>
    %cst_89 = arith.constant dense<0xFF800000> : vector<8x4xf32>
    %251 = vector.multi_reduction <maximumf>, %250, %cst_89 [0] : vector<8x8x4xf32> to vector<8x4xf32>
    %252 = vector.shape_cast %251 : vector<8x4xf32> to vector<1x8x4xf32>
    %253 = vector.broadcast %252 : vector<1x8x4xf32> to vector<8x8x4xf32>
    %254 = arith.subf %250, %253 : vector<8x8x4xf32>
    %255 = math.exp %254 : vector<8x8x4xf32>
    %cst_90 = arith.constant dense<0.000000e+00> : vector<8x4xf32>
    %256 = vector.multi_reduction <add>, %255, %cst_90 [0] : vector<8x8x4xf32> to vector<8x4xf32>
    %257 = vector.shape_cast %256 : vector<8x4xf32> to vector<1x8x4xf32>
    %258 = vector.broadcast %257 : vector<1x8x4xf32> to vector<8x8x4xf32>
    %259 = arith.divf %255, %258 : vector<8x8x4xf32>
    %cst_91 = arith.constant 0.000000e+00 : f32
    %260 = vector.broadcast %cst_91 : f32 to vector<8x32xf32>
    %261 = vector.extract_strided_slice %259 {offsets = [0, 0, 0], sizes = [1, 8, 4], strides = [1, 1, 1]} : vector<8x8x4xf32> to vector<1x8x4xf32>
    %262 = vector.shape_cast %261 : vector<1x8x4xf32> to vector<8x4xf32>
    %263 = tpu.transpose %262, [1, 0] : vector<8x4xf32> -> vector<4x8xf32>
    %c0_92 = arith.constant 0 : index
    %c0_93 = arith.constant 0 : index
    %c0_94 = arith.constant 0 : index
    %264 = vector.load %arg15[%c0_92, %c0_93, %c0_94] : memref<8x4x8xf32, #tpu.memory_space<vmem>>, vector<1x4x8xf32>
    %265 = vector.shape_cast %264 : vector<1x4x8xf32> to vector<4x8xf32>
    %266 = vector.shape_cast %263 : vector<4x8xf32> to vector<1x4x8xf32>
    tpu.vector_store %arg15[%c0_92, %c0_93, %c0_94], %266 {strides = array<i32>} : memref<8x4x8xf32, #tpu.memory_space<vmem>>, vector<1x4x8xf32>,
    %cst_95 = arith.constant dense<0.000000e+00> : vector<8xf32>
    %267 = vector.multi_reduction <add>, %262, %cst_95 [1] : vector<8x4xf32> to vector<8xf32>
    %268 = vector.shape_cast %267 : vector<8xf32> to vector<8x1xf32>
    %c0_96 = arith.constant 0 : index
    %c0_97 = arith.constant 0 : index
    %c0_98 = arith.constant 0 : index
    %269 = vector.load %arg17[%c0_96, %c0_97, %c0_98] : memref<8x8x32xbf16, #tpu.memory_space<vmem>>, vector<1x8x32xbf16>
    %270 = vector.shape_cast %269 : vector<1x8x32xbf16> to vector<8x32xbf16>
    %271 = arith.extf %270 : vector<8x32xbf16> to vector<8x32xf32>
    %272 = vector.broadcast %268 : vector<8x1xf32> to vector<8x32xf32>
    %273 = arith.mulf %272, %271 : vector<8x32xf32>
    %274 = arith.addf %260, %273 : vector<8x32xf32>
    %275 = vector.extract_strided_slice %259 {offsets = [1, 0, 0], sizes = [1, 8, 4], strides = [1, 1, 1]} : vector<8x8x4xf32> to vector<1x8x4xf32>
    %276 = vector.shape_cast %275 : vector<1x8x4xf32> to vector<8x4xf32>
    %277 = tpu.transpose %276, [1, 0] : vector<8x4xf32> -> vector<4x8xf32>
    %c1_99 = arith.constant 1 : index
    %c0_100 = arith.constant 0 : index
    %c0_101 = arith.constant 0 : index
    %278 = vector.load %arg15[%c1_99, %c0_100, %c0_101] : memref<8x4x8xf32, #tpu.memory_space<vmem>>, vector<1x4x8xf32>
    %279 = vector.shape_cast %278 : vector<1x4x8xf32> to vector<4x8xf32>
    %280 = vector.shape_cast %277 : vector<4x8xf32> to vector<1x4x8xf32>
    tpu.vector_store %arg15[%c1_99, %c0_100, %c0_101], %280 {strides = array<i32>} : memref<8x4x8xf32, #tpu.memory_space<vmem>>, vector<1x4x8xf32>,
    %cst_102 = arith.constant dense<0.000000e+00> : vector<8xf32>
    %281 = vector.multi_reduction <add>, %276, %cst_102 [1] : vector<8x4xf32> to vector<8xf32>
    %282 = vector.shape_cast %281 : vector<8xf32> to vector<8x1xf32>
    %c1_103 = arith.constant 1 : index
    %c0_104 = arith.constant 0 : index
    %c0_105 = arith.constant 0 : index
    %283 = vector.load %arg17[%c1_103, %c0_104, %c0_105] : memref<8x8x32xbf16, #tpu.memory_space<vmem>>, vector<1x8x32xbf16>
    %284 = vector.shape_cast %283 : vector<1x8x32xbf16> to vector<8x32xbf16>
    %285 = arith.extf %284 : vector<8x32xbf16> to vector<8x32xf32>
    %286 = vector.broadcast %282 : vector<8x1xf32> to vector<8x32xf32>
    %287 = arith.mulf %286, %285 : vector<8x32xf32>
    %288 = arith.addf %274, %287 : vector<8x32xf32>
    %289 = vector.extract_strided_slice %259 {offsets = [2, 0, 0], sizes = [1, 8, 4], strides = [1, 1, 1]} : vector<8x8x4xf32> to vector<1x8x4xf32>
    %290 = vector.shape_cast %289 : vector<1x8x4xf32> to vector<8x4xf32>
    %291 = tpu.transpose %290, [1, 0] : vector<8x4xf32> -> vector<4x8xf32>
    %c2_106 = arith.constant 2 : index
    %c0_107 = arith.constant 0 : index
    %c0_108 = arith.constant 0 : index
    %292 = vector.load %arg15[%c2_106, %c0_107, %c0_108] : memref<8x4x8xf32, #tpu.memory_space<vmem>>, vector<1x4x8xf32>
    %293 = vector.shape_cast %292 : vector<1x4x8xf32> to vector<4x8xf32>
    %294 = vector.shape_cast %291 : vector<4x8xf32> to vector<1x4x8xf32>
    tpu.vector_store %arg15[%c2_106, %c0_107, %c0_108], %294 {strides = array<i32>} : memref<8x4x8xf32, #tpu.memory_space<vmem>>, vector<1x4x8xf32>,
    %cst_109 = arith.constant dense<0.000000e+00> : vector<8xf32>
    %295 = vector.multi_reduction <add>, %290, %cst_109 [1] : vector<8x4xf32> to vector<8xf32>
    %296 = vector.shape_cast %295 : vector<8xf32> to vector<8x1xf32>
    %c2_110 = arith.constant 2 : index
    %c0_111 = arith.constant 0 : index
    %c0_112 = arith.constant 0 : index
    %297 = vector.load %arg17[%c2_110, %c0_111, %c0_112] : memref<8x8x32xbf16, #tpu.memory_space<vmem>>, vector<1x8x32xbf16>
    %298 = vector.shape_cast %297 : vector<1x8x32xbf16> to vector<8x32xbf16>
    %299 = arith.extf %298 : vector<8x32xbf16> to vector<8x32xf32>
    %300 = vector.broadcast %296 : vector<8x1xf32> to vector<8x32xf32>
    %301 = arith.mulf %300, %299 : vector<8x32xf32>
    %302 = arith.addf %288, %301 : vector<8x32xf32>
    %303 = vector.extract_strided_slice %259 {offsets = [3, 0, 0], sizes = [1, 8, 4], strides = [1, 1, 1]} : vector<8x8x4xf32> to vector<1x8x4xf32>
    %304 = vector.shape_cast %303 : vector<1x8x4xf32> to vector<8x4xf32>
    %305 = tpu.transpose %304, [1, 0] : vector<8x4xf32> -> vector<4x8xf32>
    %c3_113 = arith.constant 3 : index
    %c0_114 = arith.constant 0 : index
    %c0_115 = arith.constant 0 : index
    %306 = vector.load %arg15[%c3_113, %c0_114, %c0_115] : memref<8x4x8xf32, #tpu.memory_space<vmem>>, vector<1x4x8xf32>
    %307 = vector.shape_cast %306 : vector<1x4x8xf32> to vector<4x8xf32>
    %308 = vector.shape_cast %305 : vector<4x8xf32> to vector<1x4x8xf32>
    tpu.vector_store %arg15[%c3_113, %c0_114, %c0_115], %308 {strides = array<i32>} : memref<8x4x8xf32, #tpu.memory_space<vmem>>, vector<1x4x8xf32>,
    %cst_116 = arith.constant dense<0.000000e+00> : vector<8xf32>
    %309 = vector.multi_reduction <add>, %304, %cst_116 [1] : vector<8x4xf32> to vector<8xf32>
    %310 = vector.shape_cast %309 : vector<8xf32> to vector<8x1xf32>
    %c3_117 = arith.constant 3 : index
    %c0_118 = arith.constant 0 : index
    %c0_119 = arith.constant 0 : index
    %311 = vector.load %arg17[%c3_117, %c0_118, %c0_119] : memref<8x8x32xbf16, #tpu.memory_space<vmem>>, vector<1x8x32xbf16>
    %312 = vector.shape_cast %311 : vector<1x8x32xbf16> to vector<8x32xbf16>
    %313 = arith.extf %312 : vector<8x32xbf16> to vector<8x32xf32>
    %314 = vector.broadcast %310 : vector<8x1xf32> to vector<8x32xf32>
    %315 = arith.mulf %314, %313 : vector<8x32xf32>
    %316 = arith.addf %302, %315 : vector<8x32xf32>
    %317 = vector.extract_strided_slice %259 {offsets = [4, 0, 0], sizes = [1, 8, 4], strides = [1, 1, 1]} : vector<8x8x4xf32> to vector<1x8x4xf32>
    %318 = vector.shape_cast %317 : vector<1x8x4xf32> to vector<8x4xf32>
    %319 = tpu.transpose %318, [1, 0] : vector<8x4xf32> -> vector<4x8xf32>
    %c4_120 = arith.constant 4 : index
    %c0_121 = arith.constant 0 : index
    %c0_122 = arith.constant 0 : index
    %320 = vector.load %arg15[%c4_120, %c0_121, %c0_122] : memref<8x4x8xf32, #tpu.memory_space<vmem>>, vector<1x4x8xf32>
    %321 = vector.shape_cast %320 : vector<1x4x8xf32> to vector<4x8xf32>
    %322 = vector.shape_cast %319 : vector<4x8xf32> to vector<1x4x8xf32>
    tpu.vector_store %arg15[%c4_120, %c0_121, %c0_122], %322 {strides = array<i32>} : memref<8x4x8xf32, #tpu.memory_space<vmem>>, vector<1x4x8xf32>,
    %cst_123 = arith.constant dense<0.000000e+00> : vector<8xf32>
    %323 = vector.multi_reduction <add>, %318, %cst_123 [1] : vector<8x4xf32> to vector<8xf32>
    %324 = vector.shape_cast %323 : vector<8xf32> to vector<8x1xf32>
    %c4_124 = arith.constant 4 : index
    %c0_125 = arith.constant 0 : index
    %c0_126 = arith.constant 0 : index
    %325 = vector.load %arg17[%c4_124, %c0_125, %c0_126] : memref<8x8x32xbf16, #tpu.memory_space<vmem>>, vector<1x8x32xbf16>
    %326 = vector.shape_cast %325 : vector<1x8x32xbf16> to vector<8x32xbf16>
    %327 = arith.extf %326 : vector<8x32xbf16> to vector<8x32xf32>
    %328 = vector.broadcast %324 : vector<8x1xf32> to vector<8x32xf32>
    %329 = arith.mulf %328, %327 : vector<8x32xf32>
    %330 = arith.addf %316, %329 : vector<8x32xf32>
    %331 = vector.extract_strided_slice %259 {offsets = [5, 0, 0], sizes = [1, 8, 4], strides = [1, 1, 1]} : vector<8x8x4xf32> to vector<1x8x4xf32>
    %332 = vector.shape_cast %331 : vector<1x8x4xf32> to vector<8x4xf32>
    %333 = tpu.transpose %332, [1, 0] : vector<8x4xf32> -> vector<4x8xf32>
    %c5_127 = arith.constant 5 : index
    %c0_128 = arith.constant 0 : index
    %c0_129 = arith.constant 0 : index
    %334 = vector.load %arg15[%c5_127, %c0_128, %c0_129] : memref<8x4x8xf32, #tpu.memory_space<vmem>>, vector<1x4x8xf32>
    %335 = vector.shape_cast %334 : vector<1x4x8xf32> to vector<4x8xf32>
    %336 = vector.shape_cast %333 : vector<4x8xf32> to vector<1x4x8xf32>
    tpu.vector_store %arg15[%c5_127, %c0_128, %c0_129], %336 {strides = array<i32>} : memref<8x4x8xf32, #tpu.memory_space<vmem>>, vector<1x4x8xf32>,
    %cst_130 = arith.constant dense<0.000000e+00> : vector<8xf32>
    %337 = vector.multi_reduction <add>, %332, %cst_130 [1] : vector<8x4xf32> to vector<8xf32>
    %338 = vector.shape_cast %337 : vector<8xf32> to vector<8x1xf32>
    %c5_131 = arith.constant 5 : index
    %c0_132 = arith.constant 0 : index
    %c0_133 = arith.constant 0 : index
    %339 = vector.load %arg17[%c5_131, %c0_132, %c0_133] : memref<8x8x32xbf16, #tpu.memory_space<vmem>>, vector<1x8x32xbf16>
    %340 = vector.shape_cast %339 : vector<1x8x32xbf16> to vector<8x32xbf16>
    %341 = arith.extf %340 : vector<8x32xbf16> to vector<8x32xf32>
    %342 = vector.broadcast %338 : vector<8x1xf32> to vector<8x32xf32>
    %343 = arith.mulf %342, %341 : vector<8x32xf32>
    %344 = arith.addf %330, %343 : vector<8x32xf32>
    %345 = vector.extract_strided_slice %259 {offsets = [6, 0, 0], sizes = [1, 8, 4], strides = [1, 1, 1]} : vector<8x8x4xf32> to vector<1x8x4xf32>
    %346 = vector.shape_cast %345 : vector<1x8x4xf32> to vector<8x4xf32>
    %347 = tpu.transpose %346, [1, 0] : vector<8x4xf32> -> vector<4x8xf32>
    %c6_134 = arith.constant 6 : index
    %c0_135 = arith.constant 0 : index
    %c0_136 = arith.constant 0 : index
    %348 = vector.load %arg15[%c6_134, %c0_135, %c0_136] : memref<8x4x8xf32, #tpu.memory_space<vmem>>, vector<1x4x8xf32>
    %349 = vector.shape_cast %348 : vector<1x4x8xf32> to vector<4x8xf32>
    %350 = vector.shape_cast %347 : vector<4x8xf32> to vector<1x4x8xf32>
    tpu.vector_store %arg15[%c6_134, %c0_135, %c0_136], %350 {strides = array<i32>} : memref<8x4x8xf32, #tpu.memory_space<vmem>>, vector<1x4x8xf32>,
    %cst_137 = arith.constant dense<0.000000e+00> : vector<8xf32>
    %351 = vector.multi_reduction <add>, %346, %cst_137 [1] : vector<8x4xf32> to vector<8xf32>
    %352 = vector.shape_cast %351 : vector<8xf32> to vector<8x1xf32>
    %c6_138 = arith.constant 6 : index
    %c0_139 = arith.constant 0 : index
    %c0_140 = arith.constant 0 : index
    %353 = vector.load %arg17[%c6_138, %c0_139, %c0_140] : memref<8x8x32xbf16, #tpu.memory_space<vmem>>, vector<1x8x32xbf16>
    %354 = vector.shape_cast %353 : vector<1x8x32xbf16> to vector<8x32xbf16>
    %355 = arith.extf %354 : vector<8x32xbf16> to vector<8x32xf32>
    %356 = vector.broadcast %352 : vector<8x1xf32> to vector<8x32xf32>
    %357 = arith.mulf %356, %355 : vector<8x32xf32>
    %358 = arith.addf %344, %357 : vector<8x32xf32>
    %359 = vector.extract_strided_slice %259 {offsets = [7, 0, 0], sizes = [1, 8, 4], strides = [1, 1, 1]} : vector<8x8x4xf32> to vector<1x8x4xf32>
    %360 = vector.shape_cast %359 : vector<1x8x4xf32> to vector<8x4xf32>
    %361 = tpu.transpose %360, [1, 0] : vector<8x4xf32> -> vector<4x8xf32>
    %c7_141 = arith.constant 7 : index
    %c0_142 = arith.constant 0 : index
    %c0_143 = arith.constant 0 : index
    %362 = vector.load %arg15[%c7_141, %c0_142, %c0_143] : memref<8x4x8xf32, #tpu.memory_space<vmem>>, vector<1x4x8xf32>
    %363 = vector.shape_cast %362 : vector<1x4x8xf32> to vector<4x8xf32>
    %364 = vector.shape_cast %361 : vector<4x8xf32> to vector<1x4x8xf32>
    tpu.vector_store %arg15[%c7_141, %c0_142, %c0_143], %364 {strides = array<i32>} : memref<8x4x8xf32, #tpu.memory_space<vmem>>, vector<1x4x8xf32>,
    %cst_144 = arith.constant dense<0.000000e+00> : vector<8xf32>
    %365 = vector.multi_reduction <add>, %360, %cst_144 [1] : vector<8x4xf32> to vector<8xf32>
    %366 = vector.shape_cast %365 : vector<8xf32> to vector<8x1xf32>
    %c7_145 = arith.constant 7 : index
    %c0_146 = arith.constant 0 : index
    %c0_147 = arith.constant 0 : index
    %367 = vector.load %arg17[%c7_145, %c0_146, %c0_147] : memref<8x8x32xbf16, #tpu.memory_space<vmem>>, vector<1x8x32xbf16>
    %368 = vector.shape_cast %367 : vector<1x8x32xbf16> to vector<8x32xbf16>
    %369 = arith.extf %368 : vector<8x32xbf16> to vector<8x32xf32>
    %370 = vector.broadcast %366 : vector<8x1xf32> to vector<8x32xf32>
    %371 = arith.mulf %370, %369 : vector<8x32xf32>
    %372 = arith.addf %358, %371 : vector<8x32xf32>
    %cst_148 = arith.constant 2.500000e-01 : f32
    %373 = vector.broadcast %cst_148 : f32 to vector<8x32xf32>
    %374 = arith.mulf %372, %373 : vector<8x32xf32>
    %375 = arith.truncf %374 : vector<8x32xf32> to vector<8x32xbf16>
    %c0_149 = arith.constant 0 : index
    %c0_150 = arith.constant 0 : index
    %376 = vector.load %arg10[%c0_149, %c0_150] : memref<32x2048xbf16, #tpu.memory_space<vmem>>, vector<32x2048xbf16>
    %cst_151 = arith.constant dense<0.000000e+00> : vector<8x2048xf32>
    %377 = tpu.matmul %375, %376, %cst_151 {dimension_numbers = #tpu.dot_dimension_numbers<[1], [0], [0], [1], [0, 0, 1, 1], [], []>} : vector<8x32xbf16>, vector<32x2048xbf16>, vector<8x2048xf32> -> vector<8x2048xf32>
    %c0_152 = arith.constant 0 : index
    %c0_153 = arith.constant 0 : index
    %378 = vector.load %arg11[%c0_152, %c0_153] : memref<1x2048xf32, #tpu.memory_space<vmem>>, vector<1x2048xf32>
    %379 = vector.broadcast %378 : vector<1x2048xf32> to vector<8x2048xf32>
    %380 = arith.addf %377, %379 : vector<8x2048xf32>
    %381 = arith.negf %380 : vector<8x2048xf32>
    %382 = math.exp %381 : vector<8x2048xf32>
    %cst_154 = arith.constant 1.000000e+00 : f32
    %383 = vector.broadcast %cst_154 : f32 to vector<8x2048xf32>
    %384 = arith.addf %383, %382 : vector<8x2048xf32>
    %385 = arith.divf %383, %384 : vector<8x2048xf32>
    %386 = arith.truncf %385 : vector<8x2048xf32> to vector<8x2048xbf16>
    %c0_155 = arith.constant 0 : index
    %c0_156 = arith.constant 0 : index
    %387 = vector.load %arg12[%c0_155, %c0_156] : memref<2048x5xbf16, #tpu.memory_space<vmem>>, vector<2048x5xbf16>
    %cst_157 = arith.constant dense<0.000000e+00> : vector<8x5xf32>
    %388 = tpu.matmul %386, %387, %cst_157 {dimension_numbers = #tpu.dot_dimension_numbers<[1], [0], [0], [1], [0, 0, 1, 1], [], []>} : vector<8x2048xbf16>, vector<2048x5xbf16>, vector<8x5xf32> -> vector<8x5xf32>
    %c0_158 = arith.constant 0 : index
    %c0_159 = arith.constant 0 : index
    %389 = vector.load %arg13[%c0_158, %c0_159] : memref<1x5xf32, #tpu.memory_space<vmem>>, vector<1x5xf32>
    %390 = vector.broadcast %389 : vector<1x5xf32> to vector<8x5xf32>
    %391 = arith.addf %388, %390 : vector<8x5xf32>
    %cst_160 = arith.constant dense<0xFF800000> : vector<8xf32>
    %392 = vector.multi_reduction <maximumf>, %391, %cst_160 [1] : vector<8x5xf32> to vector<8xf32>
    %393 = vector.shape_cast %392 : vector<8xf32> to vector<8x1xf32>
    %394 = vector.broadcast %393 : vector<8x1xf32> to vector<8x5xf32>
    %395 = arith.subf %391, %394 : vector<8x5xf32>
    %396 = math.exp %395 : vector<8x5xf32>
    %cst_161 = arith.constant dense<0.000000e+00> : vector<8xf32>
    %397 = vector.multi_reduction <add>, %396, %cst_161 [1] : vector<8x5xf32> to vector<8xf32>
    %398 = vector.shape_cast %397 : vector<8xf32> to vector<8x1xf32>
    %399 = math.log %398 : vector<8x1xf32>
    %400 = arith.addf %399, %393 : vector<8x1xf32>
    %401 = vector.broadcast %400 : vector<8x1xf32> to vector<8x5xf32>
    %402 = arith.subf %391, %401 : vector<8x5xf32>
    %c0_162 = arith.constant 0 : index
    %c0_163 = arith.constant 0 : index
    %403 = vector.load %arg14[%c0_162, %c0_163] : memref<8x5xf32, #tpu.memory_space<vmem>>, vector<8x5xf32>
    tpu.vector_store %arg14[%c0_162, %c0_163], %402 {strides = array<i32>} : memref<8x5xf32, #tpu.memory_space<vmem>>, vector<8x5xf32>,
    return
  }
  func.func @transform_0(%arg0: i32) -> (i32, i32, i32) {
    %c0_i32 = arith.constant 0 : i32
    %c0_i32_0 = arith.constant 0 : i32
    %c0_i32_1 = arith.constant 0 : i32
    return %c0_i32, %arg0, %c0_i32_0 : i32, i32, i32
  }
  func.func @transform_1(%arg0: i32) -> (i32, i32) {
    %c0_i32 = arith.constant 0 : i32
    %c0_i32_0 = arith.constant 0 : i32
    %c0_i32_1 = arith.constant 0 : i32
    return %c0_i32, %c0_i32_0 : i32, i32
  }
  func.func @transform_2(%arg0: i32) -> (i32, i32) {
    %c0_i32 = arith.constant 0 : i32
    %c0_i32_0 = arith.constant 0 : i32
    %c0_i32_1 = arith.constant 0 : i32
    return %c0_i32, %c0_i32_0 : i32, i32
  }
  func.func @transform_3(%arg0: i32) -> (i32, i32) {
    %c0_i32 = arith.constant 0 : i32
    %c0_i32_0 = arith.constant 0 : i32
    %c0_i32_1 = arith.constant 0 : i32
    return %c0_i32, %c0_i32_0 : i32, i32
  }
  func.func @transform_4(%arg0: i32) -> (i32, i32) {
    %c0_i32 = arith.constant 0 : i32
    %c0_i32_0 = arith.constant 0 : i32
    %c0_i32_1 = arith.constant 0 : i32
    return %c0_i32, %c0_i32_0 : i32, i32
  }
  func.func @transform_5(%arg0: i32) -> (i32, i32) {
    %c0_i32 = arith.constant 0 : i32
    %c0_i32_0 = arith.constant 0 : i32
    %c0_i32_1 = arith.constant 0 : i32
    return %c0_i32, %c0_i32_0 : i32, i32
  }
  func.func @transform_6(%arg0: i32) -> (i32, i32) {
    %c0_i32 = arith.constant 0 : i32
    %c0_i32_0 = arith.constant 0 : i32
    %c0_i32_1 = arith.constant 0 : i32
    return %c0_i32, %c0_i32_0 : i32, i32
  }
  func.func @transform_7(%arg0: i32) -> (i32, i32) {
    %c0_i32 = arith.constant 0 : i32
    %c0_i32_0 = arith.constant 0 : i32
    %c0_i32_1 = arith.constant 0 : i32
    return %c0_i32, %c0_i32_0 : i32, i32
  }
  func.func @transform_8(%arg0: i32) -> (i32, i32) {
    %c0_i32 = arith.constant 0 : i32
    %c0_i32_0 = arith.constant 0 : i32
    %c0_i32_1 = arith.constant 0 : i32
    return %c0_i32, %c0_i32_0 : i32, i32
  }
  func.func @transform_9(%arg0: i32) -> (i32, i32) {
    %c0_i32 = arith.constant 0 : i32
    %c0_i32_0 = arith.constant 0 : i32
    %c0_i32_1 = arith.constant 0 : i32
    return %c0_i32, %c0_i32_0 : i32, i32
  }
  func.func @transform_10(%arg0: i32) -> (i32, i32) {
    %c0_i32 = arith.constant 0 : i32
    %c0_i32_0 = arith.constant 0 : i32
    %c0_i32_1 = arith.constant 0 : i32
    return %c0_i32, %c0_i32_0 : i32, i32
  }
  func.func @transform_11(%arg0: i32) -> (i32, i32) {
    %c0_i32 = arith.constant 0 : i32
    %c0_i32_0 = arith.constant 0 : i32
    %c0_i32_1 = arith.constant 0 : i32
    return %c0_i32, %c0_i32_0 : i32, i32
  }
  func.func @transform_12(%arg0: i32) -> (i32, i32) {
    %c0_i32 = arith.constant 0 : i32
    %c0_i32_0 = arith.constant 0 : i32
    %c0_i32_1 = arith.constant 0 : i32
    return %c0_i32, %c0_i32_0 : i32, i32
  }
  func.func @transform_13(%arg0: i32) -> (i32, i32) {
    %c0_i32 = arith.constant 0 : i32
    %c0_i32_0 = arith.constant 0 : i32
    return %arg0, %c0_i32 : i32, i32
  }
  func.func @transform_14(%arg0: i32) -> (i32, i32, i32) {
    %c0_i32 = arith.constant 0 : i32
    %c0_i32_0 = arith.constant 0 : i32
    %c0_i32_1 = arith.constant 0 : i32
    return %c0_i32, %c0_i32_0, %arg0 : i32, i32, i32
  }
}

</mosaic_0001>

<bundles_post_ra>
// kernel: tpu_custom_call.1
= control target key start
LH: loop header
LB: loop body
LE: loop exit
PB: predicated region body
PF: predicated region fallthrough
CT: control target
= control target key end

     0   :  { %20 = vsyncpa [#allocation5], 0  ;;  %vm117_vm0 = vcmask 261120   ;;  %v49_v1 = vlaneseq  ;;  %v4538_v4 = vmov 0.0   ;;  %v4539_v12 = vmov 1.0   ;;  %s5531_s0 = inlined_call_operand.vmem [shape: bf16[8,8,32], index: 0, kind: input, shape index: {}]   ;;  %s5532_s1 = inlined_call_operand.vmem [shape: bf16[32,128], index: 1, kind: input, shape index: {}]   ;;  %s5533_s2 = inlined_call_operand.vmem [shape: f32[1,128], index: 2, kind: input, shape index: {}]   ;;  %s5534_s3 = inlined_call_operand.vmem [shape: bf16[32,128], index: 3, kind: input, shape index: {}]   ;;  %s5535_s4 = inlined_call_operand.vmem [shape: f32[1,128], index: 4, kind: input, shape index: {}]   ;;  %s5536_s5 = inlined_call_operand.vmem [shape: bf16[32,16], index: 5, kind: input, shape index: {}]   ;;  %s5537_s6 = inlined_call_operand.vmem [shape: f32[1,16], index: 6, kind: input, shape index: {}]   ;;  %s5538_s7 = inlined_call_operand.vmem [shape: bf16[16,4], index: 7, kind: input, shape index: {}]   ;;  %s5539_s8 = inlined_call_operand.vmem [shape: f32[1,4], index: 8, kind: input, shape index: {}]   ;;  %s5540_s9 = inlined_call_operand.vmem [shape: bf16[32,2048], index: 9, kind: input, shape index: {}]   ;;  %s5541_s10 = inlined_call_operand.vmem [shape: f32[1,2048], index: 10, kind: input, shape index: {}]   ;;  %s5542_s11 = inlined_call_operand.vmem [shape: bf16[2048,5], index: 11, kind: input, shape index: {}]   ;;  %s5543_s12 = inlined_call_operand.vmem [shape: f32[1,5], index: 12, kind: input, shape index: {}]   ;;  %s5544_s13 = inlined_call_operand.hbm [shape: f32[8,5], index: 13, kind: output, shape index: {0}]   ;;  %s5545_s14 = inlined_call_operand.hbm [shape: f32[8,4,8], index: 14, kind: output, shape index: {1}]  }
   0x1   :  { %v4203_v0 = vld [vmem:[%s5532_s1 + $0x8] sm:$0xff]   ;;  %v4204_v2 = vld [vmem:[%s5532_s1] sm:$0xff]   ;;  %4108 = vmatprep.subr.bf16.mxu1 %v4538_v4  ;;  %vm4540_vm4 = vmmov 0   ;;  %v4541_v21 = vmov 0  }
   0x2   :  { %4096 = vmatprep.subr.bf16.mxu0 %v4203_v0  ;;  %v4205_v3 = vld [vmem:[%s5531_s0] sm:$0xff]   ;;  %v50_v5 = vand.u32 127, %v49_v1  ;;  %v4206_v6 = vld [vmem:[%s5531_s0 + $0x8] sm:$0xff]   ;;  %4112 = vmatprep.mubr.msk.bf16.mxu1 %vm4540_vm4, %v4538_v4 }
   0x3   :  { %4097 = vmatpush3.bf16.msra.mxu0 %v4203_v0  ;;  %4100 = vmatprep.mubr.msk.bf16.mxu0 %vm117_vm0, %v4205_v3  ;;  %v58_v7 = vld [vmem:[%s5534_s3 + $0x8] sm:$0xf]  ;;  %v59_v8 = vld [vmem:[%s5534_s3 + $0xc] sm:$0xf]  ;;  %v56_v10 = vld [vmem:[%s5534_s3] sm:$0xf] }
   0x4   :  { %4098 = vmatprep.subr.bf16.mxu0 %v4204_v2  ;;  %vm51_vm1 = vcmp.ge.s32.totalorder %v50_v5, 64  ;;  %vm52_vm2 = vcmp.lt.s32.totalorder %v50_v5, 96  ;;  %v57_v11 = vld [vmem:[%s5534_s3 + $0x4] sm:$0xf] }
   0x5   :  { %vm4642_vm3 = vmand %vm51_vm1, %vm52_vm2 }
   0x6   :  { %v4654_v13 = vsel %vm4642_vm3, 2.0, %v4539_v12 }
   0x7   :  { %4099 = vmatpush3.bf16.msra.mxu0 %v4204_v2  ;;  %v3870_v14 = vpack.c.bf16 %v4654_v13, %v4654_v13 }
   0x8   :  { %4124 = vmatprep.subr.bf16.mxu0 %v4538_v4 }
   0x9   :  { %v67_v15 = vmul.bf16 %v3870_v14, %v58_v7  ;;  %v68_v16 = vmul.bf16 %v3870_v14, %v59_v8  ;;  %v65_v17 = vmul.bf16 %v3870_v14, %v56_v10  ;;  %v66_v18 = vmul.bf16 %v3870_v14, %v57_v11 }
   0xa   :  { %4101 = vmatmul.mubr.msk.bf16.vlgmr.msra.gmra.mxu0 %vm117_vm0, %v4206_v6 }
   0xb   :  { %v4662_v19 = vcombine.low %v67_v15, %v68_v16  ;;  %v4665_v20 = vcombine.low %v65_v17, %v66_v18 }
   0xd   :  { %4109 = vmatpush3.bf16.msra.mxu1 %v4662_v19  ;;  %4125 = vmatpush3.bf16.msra.mxu0 %v4662_v19 }
   0xe   :  { %4110 = vmatprep.subr.bf16.mxu1 %v4538_v4  ;;  %4126 = vmatprep.subr.bf16.mxu0 %v4538_v4 }
  0x11   :  { %4111 = vmatpush3.bf16.msra.mxu1 %v4665_v20  ;;  %4127 = vmatpush3.bf16.msra.mxu0 %v4665_v20 }
  0x12   :  { %4116 = vmatprep.subr.bf16.mxu1 %v4538_v4  ;;  %4140 = vmatprep.subr.bf16.mxu0 %v4538_v4 }
  0x14   :  { %4113 = vmatmul.mubr.bf16.vlgmr.msra.gmra.mxu1 %v4541_v21 }
  0x15   :  { %4117 = vmatpush3.bf16.msra.mxu1 %v4662_v19  ;;  %4120 = vmatprep.mubr.msk.bf16.mxu1 %vm4540_vm4, %v4538_v4 }
  0x16   :  { %4118 = vmatprep.subr.bf16.mxu1 %v4538_v4 }
  0x19   :  { %4119 = vmatpush3.bf16.msra.mxu1 %v4665_v20 }
  0x1a   :  { %4132 = vmatprep.subr.bf16.mxu1 %v4538_v4 }
  0x1b   :  { %21 = vsyncpa [#allocation7], 0  ;;  %v69_v22 = vld [vmem:[%s5533_s2] sm:$0x1]  ;;  %v4687_v25 = vshrl.u32 %v49_v1, 7  ;;  %v4703_v42 = vsel %vm4642_vm3, 1.0, %v4538_v4 }
  0x1c   :  { %v70_v23 = vld [vmem:[%s5535_s4] sm:$0x1]  ;;  %s4542_s2 = smov 64   ;;  %s4543_s4 = smov 32   ;;  %v4207_v12 = vld [vmem:[%s5531_s0 + $0x10] sm:$0xff]   ;;  %v4208_v14 = vld [vmem:[%s5531_s0 + $0x18] sm:$0xff]  }
  0x1d   :  { %v71_v24 = vadd.f32 %v70_v23, %v69_v22  ;;  %v4693_v28 = vsub.s32 0, %v4687_v25  ;;  %4104 = vmatprep.mubr.msk.bf16.mxu0 %vm117_vm0, %v4207_v12  ;;  %vm314_vm5 = vcmask 257024   ;;  %vm1045_vm6 = vcmask 130048  }
  0x1e   :  { %4105 = vmatmul.mubr.msk.bf16.gmra.mxu0 %vm117_vm0, %v4208_v14  ;;  %vm1123_vm7 = vcmask 31744   ;;  %vm1219_vm8 = vcmask 60416   ;;  %vm3587_vm9 = vcmask 39936  }
  0x1f   :  { %v72_v27 = vmul.f32 %v71_v24, %v4654_v13  ;;  %4128 = vmatprep.mubr.msk.bf16.mxu0 %vm4540_vm4, %v4538_v4 }
  0x21   :  { %v4697_v31 = vrot.slane %v72_v27, %v4693_v28 }
  0xca   :  { %v4689_v26 = vpop.f32.mrf.mxu0 }
  0xcc   :  { %v164_v29 = vpop.f32.mrf.mxu0 }
  0xcd   :  { %v195_v30 = vmul.f32 %v164_v29, %v4654_v13  ;;  %v197_v29 = vmul.f32 %v4689_v26, %v4654_v13 }
  0xce   :  { %v4721_v55 = vpop.f32.mrf.mxu0 }
  0xcf   :  { %v209_v32 = vadd.f32 %v4697_v31, %v195_v30 }
  0xd0   :  { %v167_v56 = vpop.f32.mrf.mxu0 }
  0xd1   :  { %v196_v57 = vmul.f32 %v167_v56, %v4654_v13  ;;  %v198_v56 = vmul.f32 %v4721_v55, %v4654_v13 }
  0xd3   :  { %v210_v58 = vadd.f32 %v4697_v31, %v196_v57  ;;  %v212_v57 = vadd.f32 %v4697_v31, %v198_v56 }
  0xd4   :  { %v275_v33 = vpop.f32.mrf.mxu1 }
  0xd5   :  { %v281_v34 = vadd.f32 %v275_v33, %v209_v32  ;;  %v211_v32 = vadd.f32 %v4697_v31, %v197_v29 }
  0xd6   :  { %v4114_v35 = vpop.f32.mrf.mxu1 }
  0xd7   :  { %v3645_v36 = vmul.f32 -1.442695, %v281_v34 }
  0xd8   :  { %v278_v37 = vpop.f32.mrf.mxu1 }
  0xd9   :  { %4344 = vpow2.f32 %v3645_v36 }
  0xda   :  { %v4115_v38 = vpop.f32.mrf.mxu1 }
  0xde   :  { %v4751_v23 = vpop.f32.mrf.mxu0 }
  0xe0   :  { %v4753_v24 = vpop.f32.mrf.mxu0 }
  0xe2   :  { %v4755_v27 = vpop.f32.mrf.mxu0 }
  0xe4   :  { %v4759_v30 = vpop.f32.mrf.mxu0 }
  0xe6   :  { %v4345_v39 = vpop.eup %4344 }
  0xe7   :  { %v285_v40 = vadd.f32 1.0, %v4345_v39 }
  0xe9   :  { %4346 = vrcp.f32 %v285_v40 }
  0xf6   :  { %v4347_v41 = vpop.eup %4346 }
  0xf7   :  { %v288_v43 = vmul.f32 %v4347_v41, %v4654_v13 }
  0xf9   :  { %v289_v44 = vsub.f32 %v288_v43, %v4703_v42 }
  0xfb   :  { %292 = vrot.lane.b32.xlu0 %v289_v44, %s4542_s2  ;;  %v290_v47 = vmul.f32 0.0, %v289_v44 }
 0x16d   :  { %v293_v45 = vpop.permute.xlu0 %292 }
 0x16e   :  { %v295_v46 = vmul.f32 %v293_v45, %v289_v44 }
 0x170   :  { %297 = vrot.lane.b32.xlu0 %v295_v46, %s4543_s4 }
 0x1e2   :  { %v298_v48 = vpop.permute.xlu0 %297 }
 0x1e3   :  { %v300_v49 = vadd.f32 %v298_v48, %v290_v47 }
 0x1e5   :  { %4348 = vtanh.f32 %v300_v49 }
 0x1f2   :  { %v4349_v50 = vpop.eup %4348 }
 0x1f3   :  { %303 = vrot.lane.b32.xlu1 %v4349_v50, %s4542_s2 }
 0x265   :  { %v304_v51 = vpop.permute.xlu1 %303 }
 0x266   :  { %v306_v52 = vmul.f32 %v304_v51, %v289_v44 }
 0x268   :  { %v4710_v53 = vpack.c.bf16 %v306_v52, %v306_v52 }
 0x26a   :  { %318 = vrot.lane.b32.xlu1 %v4710_v53, %s4543_s4 }
 0x2dc   :  { %v319_v54 = vpop.permute.xlu1 %318 }
 0x2dd   :  { %4121 = vmatmul.mubr.msk.bf16.vlgmr.msra.gmra.mxu1 %vm117_vm0, %v319_v54 }
 0x2de   :  { %4133 = vmatpush3.bf16.msra.mxu1 %v4662_v19  ;;  %4136 = vmatprep.mubr.msk.bf16.mxu1 %vm4540_vm4, %v4538_v4 }
 0x2df   :  { %4134 = vmatprep.subr.bf16.mxu1 %v4538_v4 }
 0x2e2   :  { %4135 = vmatpush3.bf16.msra.mxu1 %v4665_v20 }
 0x2e3   :  { %4148 = vmatprep.subr.bf16.mxu1 %v4538_v4 }
 0x39d   :  { %v357_v59 = vpop.f32.mrf.mxu1 }
 0x39e   :  { %v363_v60 = vadd.f32 %v357_v59, %v210_v58 }
 0x39f   :  { %v4122_v61 = vpop.f32.mrf.mxu1 }
 0x3a0   :  { %v3648_v62 = vmul.f32 -1.442695, %v363_v60 }
 0x3a1   :  { %v360_v63 = vpop.f32.mrf.mxu1 }
 0x3a2   :  { %4350 = vpow2.f32 %v3648_v62 }
 0x3a3   :  { %v4123_v0 = vpop.f32.mrf.mxu1 }
 0x3af   :  { %v4351_v1 = vpop.eup %4350 }
 0x3b0   :  { %v367_v2 = vadd.f32 1.0, %v4351_v1 }
 0x3b2   :  { %4352 = vrcp.f32 %v367_v2 }
 0x3bf   :  { %v4353_v3 = vpop.eup %4352 }
 0x3c0   :  { %v370_v5 = vmul.f32 %v4353_v3, %v4654_v13 }
 0x3c2   :  { %v371_v6 = vsub.f32 %v370_v5, %v4703_v42 }
 0x3c4   :  { %374 = vrot.lane.b32.xlu0 %v371_v6, %s4542_s2  ;;  %v372_v9 = vmul.f32 %v371_v6, %v300_v49 }
 0x436   :  { %v375_v7 = vpop.permute.xlu0 %374 }
 0x437   :  { %v377_v8 = vmul.f32 %v375_v7, %v371_v6 }
 0x439   :  { %379 = vrot.lane.b32.xlu1 %v377_v8, %s4543_s4 }
 0x4ab   :  { %v380_v10 = vpop.permute.xlu1 %379 }
 0x4ac   :  { %v382_v11 = vadd.f32 %v380_v10, %v372_v9 }
 0x4ae   :  { %4354 = vtanh.f32 %v382_v11 }
 0x4bb   :  { %v4355_v15 = vpop.eup %4354 }
 0x4bc   :  { %385 = vrot.lane.b32.xlu0 %v4355_v15, %s4542_s2 }
 0x52e   :  { %v386_v16 = vpop.permute.xlu0 %385 }
 0x52f   :  { %v388_v17 = vmul.f32 %v386_v16, %v371_v6  ;;  %v199_v16 = vmul.f32 %v4753_v24, %v4654_v13 }
 0x531   :  { %v4740_v18 = vpack.c.bf16 %v388_v17, %v388_v17  ;;  %v213_v17 = vadd.f32 %v4697_v31, %v199_v16 }
 0x533   :  { %400 = vrot.lane.b32.xlu1 %v4740_v18, %s4543_s4 }
 0x5a5   :  { %v401_v22 = vpop.permute.xlu1 %400 }
 0x5a6   :  { %4129 = vmatmul.mubr.msk.bf16.vlgmr.msra.gmra.mxu0 %vm117_vm0, %v401_v22 }
 0x5a7   :  { %4141 = vmatpush3.bf16.msra.mxu0 %v4662_v19  ;;  %4144 = vmatprep.mubr.msk.bf16.mxu0 %vm4540_vm4, %v4538_v4 }
 0x5a8   :  { %4142 = vmatprep.subr.bf16.mxu0 %v4538_v4 }
 0x5ab   :  { %4143 = vmatpush3.bf16.msra.mxu0 %v4665_v20 }
 0x5ac   :  { %4156 = vmatprep.subr.bf16.mxu0 %v4538_v4 }
 0x666   :  { %v439_v33 = vpop.f32.mrf.mxu0 }
 0x667   :  { %v445_v34 = vadd.f32 %v439_v33, %v211_v32 }
 0x668   :  { %v4130_v35 = vpop.f32.mrf.mxu0 }
 0x669   :  { %v3651_v36 = vmul.f32 -1.442695, %v445_v34 }
 0x66a   :  { %v442_v37 = vpop.f32.mrf.mxu0 }
 0x66b   :  { %4356 = vpow2.f32 %v3651_v36 }
 0x66c   :  { %v4131_v38 = vpop.f32.mrf.mxu0 }
 0x678   :  { %v4357_v39 = vpop.eup %4356 }
 0x679   :  { %v449_v40 = vadd.f32 1.0, %v4357_v39 }
 0x67b   :  { %4358 = vrcp.f32 %v449_v40 }
 0x688   :  { %v4359_v41 = vpop.eup %4358 }
 0x689   :  { %v452_v43 = vmul.f32 %v4359_v41, %v4654_v13 }
 0x68b   :  { %v453_v44 = vsub.f32 %v452_v43, %v4703_v42 }
 0x68d   :  { %456 = vrot.lane.b32.xlu0 %v453_v44, %s4542_s2  ;;  %v454_v46 = vmul.f32 %v453_v44, %v382_v11 }
 0x6ff   :  { %v457_v26 = vpop.permute.xlu0 %456 }
 0x700   :  { %v459_v45 = vmul.f32 %v457_v26, %v453_v44 }
 0x702   :  { %461 = vrot.lane.b32.xlu1 %v459_v45, %s4543_s4 }
 0x774   :  { %v462_v47 = vpop.permute.xlu1 %461 }
 0x775   :  { %v464_v48 = vadd.f32 %v462_v47, %v454_v46 }
 0x777   :  { %4360 = vtanh.f32 %v464_v48 }
 0x784   :  { %v4361_v49 = vpop.eup %4360 }
 0x785   :  { %467 = vrot.lane.b32.xlu0 %v4361_v49, %s4542_s2 }
 0x7f7   :  { %v468_v50 = vpop.permute.xlu0 %467 }
 0x7f8   :  { %v470_v51 = vmul.f32 %v468_v50, %v453_v44  ;;  %v200_v50 = vmul.f32 %v4759_v30, %v4654_v13 }
 0x7fa   :  { %v4767_v52 = vpack.c.bf16 %v470_v51, %v470_v51  ;;  %v214_v51 = vadd.f32 %v4697_v31, %v200_v50 }
 0x7fc   :  { %482 = vrot.lane.b32.xlu1 %v4767_v52, %s4543_s4 }
 0x86e   :  { %v483_v54 = vpop.permute.xlu1 %482 }
 0x86f   :  { %4137 = vmatmul.mubr.msk.bf16.vlgmr.msra.gmra.mxu1 %vm117_vm0, %v483_v54 }
 0x870   :  { %4149 = vmatpush3.bf16.msra.mxu1 %v4662_v19  ;;  %4152 = vmatprep.mubr.msk.bf16.mxu1 %vm4540_vm4, %v4538_v4 }
 0x871   :  { %4150 = vmatprep.subr.bf16.mxu1 %v4538_v4 }
 0x874   :  { %4151 = vmatpush3.bf16.msra.mxu1 %v4665_v20 }
 0x875   :  { %4164 = vmatprep.subr.bf16.mxu1 %v4538_v4 }
 0x92f   :  { %v521_v58 = vpop.f32.mrf.mxu1 }
 0x930   :  { %v527_v59 = vadd.f32 %v521_v58, %v212_v57 }
 0x931   :  { %v4138_v60 = vpop.f32.mrf.mxu1 }
 0x932   :  { %v3654_v61 = vmul.f32 -1.442695, %v527_v59 }
 0x933   :  { %v524_v62 = vpop.f32.mrf.mxu1 }
 0x934   :  { %4362 = vpow2.f32 %v3654_v61 }
 0x935   :  { %v4139_v63 = vpop.f32.mrf.mxu1 }
 0x941   :  { %v4363_v0 = vpop.eup %4362 }
 0x942   :  { %v531_v1 = vadd.f32 1.0, %v4363_v0 }
 0x944   :  { %4364 = vrcp.f32 %v531_v1 }
 0x951   :  { %v4365_v2 = vpop.eup %4364 }
 0x952   :  { %v534_v3 = vmul.f32 %v4365_v2, %v4654_v13 }
 0x954   :  { %v535_v5 = vsub.f32 %v534_v3, %v4703_v42 }
 0x956   :  { %538 = vrot.lane.b32.xlu0 %v535_v5, %s4542_s2  ;;  %v536_v7 = vmul.f32 %v535_v5, %v464_v48 }
 0x9c8   :  { %v539_v55 = vpop.permute.xlu0 %538 }
 0x9c9   :  { %v541_v6 = vmul.f32 %v539_v55, %v535_v5 }
 0x9cb   :  { %543 = vrot.lane.b32.xlu1 %v541_v6, %s4543_s4 }
 0xa3d   :  { %v544_v8 = vpop.permute.xlu1 %543 }
 0xa3e   :  { %v546_v9 = vadd.f32 %v544_v8, %v536_v7  ;;  %v201_v8 = vmul.f32 %v4751_v23, %v4654_v13 }
 0xa40   :  { %4366 = vtanh.f32 %v546_v9 }
 0xa4d   :  { %v4367_v10 = vpop.eup %4366 }
 0xa4e   :  { %549 = vrot.lane.b32.xlu0 %v4367_v10, %s4542_s2 }
 0xac0   :  { %v550_v11 = vpop.permute.xlu0 %549 }
 0xac1   :  { %v552_v12 = vmul.f32 %v550_v11, %v535_v5 }
 0xac3   :  { %v4786_v14 = vpack.c.bf16 %v552_v12, %v552_v12 }
 0xac5   :  { %564 = vrot.lane.b32.xlu1 %v4786_v14, %s4543_s4 }
 0xb37   :  { %v565_v15 = vpop.permute.xlu1 %564 }
 0xb38   :  { %4145 = vmatmul.mubr.msk.bf16.vlgmr.msra.gmra.mxu0 %vm117_vm0, %v565_v15 }
 0xb39   :  { %4157 = vmatpush3.bf16.msra.mxu0 %v4662_v19  ;;  %4160 = vmatprep.mubr.msk.bf16.mxu0 %vm4540_vm4, %v4538_v4 }
 0xb3a   :  { %4158 = vmatprep.subr.bf16.mxu0 %v4538_v4 }
 0xb3d   :  { %4159 = vmatpush3.bf16.msra.mxu0 %v4665_v20 }
 0xbf8   :  { %v603_v22 = vpop.f32.mrf.mxu0 }
 0xbf9   :  { %v609_v29 = vadd.f32 %v603_v22, %v213_v17 }
 0xbfa   :  { %v4146_v32 = vpop.f32.mrf.mxu0 }
 0xbfb   :  { %v3657_v33 = vmul.f32 -1.442695, %v609_v29 }
 0xbfc   :  { %v606_v34 = vpop.f32.mrf.mxu0 }
 0xbfd   :  { %4368 = vpow2.f32 %v3657_v33 }
 0xbfe   :  { %v4147_v35 = vpop.f32.mrf.mxu0 }
 0xc0a   :  { %v4369_v36 = vpop.eup %4368 }
 0xc0b   :  { %v613_v37 = vadd.f32 1.0, %v4369_v36 }
 0xc0d   :  { %4370 = vrcp.f32 %v613_v37 }
 0xc1a   :  { %v4371_v38 = vpop.eup %4370 }
 0xc1b   :  { %v616_v39 = vmul.f32 %v4371_v38, %v4654_v13 }
 0xc1d   :  { %v617_v40 = vsub.f32 %v616_v39, %v4703_v42 }
 0xc1f   :  { %620 = vrot.lane.b32.xlu0 %v617_v40, %s4542_s2  ;;  %v618_v43 = vmul.f32 %v617_v40, %v546_v9  ;;  %v215_v9 = vadd.f32 %v4697_v31, %v201_v8  ;;  %v3668_v8 = vld [vmem:[%s5537_s6] ss:$0 sm:$0xff] }
 0xc91   :  { %v621_v24 = vpop.permute.xlu0 %620 }
 0xc92   :  { %v623_v41 = vmul.f32 %v621_v24, %v617_v40 }
 0xc94   :  { %625 = vrot.lane.b32.xlu1 %v623_v41, %s4543_s4 }
 0xd06   :  { %v626_v44 = vpop.permute.xlu1 %625 }
 0xd07   :  { %v628_v26 = vadd.f32 %v626_v44, %v618_v43  ;;  %v202_v44 = vmul.f32 %v4755_v27, %v4654_v13 }
 0xd09   :  { %4372 = vtanh.f32 %v628_v26 }
 0xd16   :  { %v4373_v45 = vpop.eup %4372 }
 0xd17   :  { %631 = vrot.lane.b32.xlu0 %v4373_v45, %s4542_s2 }
 0xd89   :  { %v632_v46 = vpop.permute.xlu0 %631 }
 0xd8a   :  { %v634_v47 = vmul.f32 %v632_v46, %v617_v40 }
 0xd8c   :  { %v4804_v48 = vpack.c.bf16 %v634_v47, %v634_v47 }
 0xd8e   :  { %646 = vrot.lane.b32.xlu1 %v4804_v48, %s4543_s4 }
 0xe00   :  { %v647_v49 = vpop.permute.xlu1 %646 }
 0xe01   :  { %4153 = vmatmul.mubr.msk.bf16.vlgmr.msra.gmra.mxu1 %vm117_vm0, %v647_v49 }
 0xe02   :  { %4165 = vmatpush3.bf16.msra.mxu1 %v4662_v19  ;;  %4168 = vmatprep.mubr.msk.bf16.mxu1 %vm4540_vm4, %v4538_v4 }
 0xe03   :  { %4166 = vmatprep.subr.bf16.mxu1 %v4538_v4 }
 0xe06   :  { %4167 = vmatpush3.bf16.msra.mxu1 %v4665_v20 }
 0xec1   :  { %v685_v54 = vpop.f32.mrf.mxu1 }
 0xec2   :  { %v691_v56 = vadd.f32 %v685_v54, %v214_v51 }
 0xec3   :  { %v4154_v57 = vpop.f32.mrf.mxu1 }
 0xec4   :  { %v3660_v58 = vmul.f32 -1.442695, %v691_v56 }
 0xec5   :  { %v688_v59 = vpop.f32.mrf.mxu1 }
 0xec6   :  { %4374 = vpow2.f32 %v3660_v58 }
 0xec7   :  { %v4155_v60 = vpop.f32.mrf.mxu1 }
 0xed3   :  { %v4375_v19 = vpop.eup %4374 }
 0xed4   :  { %v695_v61 = vadd.f32 1.0, %v4375_v19 }
 0xed6   :  { %4376 = vrcp.f32 %v695_v61 }
 0xee3   :  { %v4377_v62 = vpop.eup %4376 }
 0xee4   :  { %v698_v4 = vmul.f32 %v4377_v62, %v4654_v13 }
 0xee6   :  { %v699_v20 = vsub.f32 %v698_v4, %v4703_v42 }
 0xee8   :  { %702 = vrot.lane.b32.xlu0 %v699_v20, %s4542_s2  ;;  %v700_v0 = vmul.f32 %v699_v20, %v628_v26  ;;  %v216_v26 = vadd.f32 %v4697_v31, %v202_v44 }
 0xf5a   :  { %v703_v30 = vpop.permute.xlu0 %702 }
 0xf5b   :  { %v705_v63 = vmul.f32 %v703_v30, %v699_v20 }
 0xf5d   :  { %707 = vrot.lane.b32.xlu1 %v705_v63, %s4543_s4 }
 0xfcf   :  { %v708_v1 = vpop.permute.xlu1 %707 }
 0xfd0   :  { %v710_v2 = vadd.f32 %v708_v1, %v700_v0 }
 0xfd2   :  { %4378 = vtanh.f32 %v710_v2 }
 0xfdf   :  { %v4379_v3 = vpop.eup %4378 }
 0xfe0   :  { %713 = vrot.lane.b32.xlu0 %v4379_v3, %s4542_s2 }
0x1052   :  { %v714_v5 = vpop.permute.xlu0 %713 }
0x1053   :  { %v716_v55 = vmul.f32 %v714_v5, %v699_v20  ;;  %v4215_v5 = vld [vmem:[%s5538_s7] sm:$0xff]  }
0x1054   :  { %4184 = vmatprep.subr.bf16.mxu1 %v4215_v5 }
0x1055   :  { %v4822_v6 = vpack.c.bf16 %v716_v55, %v716_v55 }
0x1057   :  { %728 = vrot.lane.b32.xlu1 %v4822_v6, %s4543_s4 }
0x10c9   :  { %v729_v7 = vpop.permute.xlu1 %728 }
0x10ca   :  { %4161 = vmatmul.mubr.msk.bf16.vlgmr.msra.gmra.mxu0 %vm117_vm0, %v729_v7 }
0x118a   :  { %v767_v10 = vpop.f32.mrf.mxu0 }
0x118b   :  { %v773_v11 = vadd.f32 %v767_v10, %v215_v9 }
0x118c   :  { %v4162_v12 = vpop.f32.mrf.mxu0 }
0x118d   :  { %v3663_v15 = vmul.f32 -1.442695, %v773_v11 }
0x118e   :  { %v770_v16 = vpop.f32.mrf.mxu0 }
0x118f   :  { %4380 = vpow2.f32 %v3663_v15 }
0x1190   :  { %v4163_v17 = vpop.f32.mrf.mxu0 }
0x119c   :  { %v4381_v22 = vpop.eup %4380 }
0x119d   :  { %v777_v29 = vadd.f32 1.0, %v4381_v22 }
0x119f   :  { %4382 = vrcp.f32 %v777_v29 }
0x11ac   :  { %v4383_v32 = vpop.eup %4382 }
0x11ad   :  { %v780_v33 = vmul.f32 %v4383_v32, %v4654_v13 }
0x11af   :  { %v781_v34 = vsub.f32 %v780_v33, %v4703_v42 }
0x11b1   :  { %784 = vrot.lane.b32.xlu0 %v781_v34, %s4542_s2  ;;  %v782_v36 = vmul.f32 %v781_v34, %v710_v2 }
0x1223   :  { %v785_v23 = vpop.permute.xlu0 %784 }
0x1224   :  { %v787_v35 = vmul.f32 %v785_v23, %v781_v34 }
0x1226   :  { %789 = vrot.lane.b32.xlu1 %v787_v35, %s4543_s4 }
0x1298   :  { %v790_v37 = vpop.permute.xlu1 %789 }
0x1299   :  { %v792_v38 = vadd.f32 %v790_v37, %v782_v36 }
0x129b   :  { %4384 = vtanh.f32 %v792_v38 }
0x12a8   :  { %v4385_v39 = vpop.eup %4384 }
0x12a9   :  { %795 = vrot.lane.b32.xlu0 %v4385_v39, %s4542_s2 }
0x131b   :  { %v796_v40 = vpop.permute.xlu0 %795 }
0x131c   :  { %v798_v24 = vmul.f32 %v796_v40, %v781_v34 }
0x131e   :  { %v799_v41 = vpack.c.bf16 %v798_v24, %v798_v24 }
0x1320   :  { %810 = vrot.lane.b32.xlu1 %v799_v41, %s4543_s4 }
0x1392   :  { %v811_v43 = vpop.permute.xlu1 %810 }
0x1393   :  { %4169 = vmatmul.mubr.msk.bf16.vlgmr.msra.gmra.mxu1 %vm117_vm0, %v811_v43 }
0x1394   :  { %4185 = vmatpush3.bf16.msra.mxu1 %v4215_v5 }
0x1453   :  { %v849_v45 = vpop.f32.mrf.mxu1 }
0x1454   :  { %v855_v46 = vadd.f32 %v849_v45, %v216_v26 }
0x1455   :  { %v4170_v47 = vpop.f32.mrf.mxu1 }
0x1456   :  { %v3666_v49 = vmul.f32 -1.442695, %v855_v46 }
0x1457   :  { %v852_v50 = vpop.f32.mrf.mxu1 }
0x1458   :  { %4386 = vpow2.f32 %v3666_v49 }
0x1459   :  { %v4171_v51 = vpop.f32.mrf.mxu1 }
0x1465   :  { %v4387_v54 = vpop.eup %4386 }
0x1466   :  { %v859_v56 = vadd.f32 1.0, %v4387_v54 }
0x1468   :  { %4388 = vrcp.f32 %v859_v56 }
0x1475   :  { %v4389_v57 = vpop.eup %4388 }
0x1476   :  { %v862_v58 = vmul.f32 %v4389_v57, %v4654_v13  ;;  %v3679_v57 = vld [vmem:[%s5539_s8] ss:$0 sm:$0xff] }
0x1478   :  { %v863_v59 = vsub.f32 %v862_v58, %v4703_v42 }
0x147a   :  { %866 = vrot.lane.b32.xlu0 %v863_v59, %s4542_s2  ;;  %v864_v13 = vmul.f32 %v863_v59, %v792_v38 }
0x14ec   :  { %v867_v27 = vpop.permute.xlu0 %866 }
0x14ed   :  { %v869_v60 = vmul.f32 %v867_v27, %v863_v59 }
0x14ef   :  { %871 = vrot.lane.b32.xlu1 %v869_v60, %s4543_s4 }
0x14f3   :  { %311 = vrot.lane.b32.xlu1 %v4710_v53, %s4543_s4  ;;  %v4209_v53 = vld [vmem:[%s5536_s5 + $0x8] sm:$0xff]  }
0x14f4   :  { %4172 = vmatprep.subr.bf16.mxu0 %v4209_v53 }
0x14f5   :  { %4173 = vmatpush3.bf16.msra.mxu0 %v4209_v53 }
0x14f7   :  { %475 = vrot.lane.b32.xlu1 %v4767_v52, %s4543_s4 }
0x14fb   :  { %639 = vrot.lane.b32.xlu1 %v4804_v48, %s4543_s4  ;;  %v4210_v48 = vld [vmem:[%s5536_s5] sm:$0xff]  }
0x14fc   :  { %4174 = vmatprep.subr.bf16.mxu0 %v4210_v48 }
0x14fd   :  { %4175 = vmatpush3.bf16.msra.mxu0 %v4210_v48 }
0x14ff   :  { %803 = vrot.lane.b32.xlu1 %v799_v41, %s4543_s4 }
0x1561   :  { %v872_v31 = vpop.permute.xlu1 %871 }
0x1562   :  { %v874_v42 = vadd.f32 %v872_v31, %v864_v13 }
0x1564   :  { %4390 = vtanh.f32 %v874_v42 }
0x1565   :  { %v312_v19 = vpop.permute.xlu1 %311 }
0x1566   :  { %315 = vst.msk [vmem:[#allocation3] sm:$0xf] %vm314_vm5, %v312_v19 }
0x1569   :  { %v476_v61 = vpop.permute.xlu1 %475 }
0x156a   :  { %479 = vst.msk [vmem:[#allocation3 + $0x8] sm:$0xf] %vm314_vm5, %v476_v61 }
0x156d   :  { %v640_v52 = vpop.permute.xlu1 %639 }
0x156e   :  { %643 = vst.msk [vmem:[#allocation3 + $0x10] sm:$0xf] %vm314_vm5, %v640_v52 }
0x1571   :  { %v4391_v62 = vpop.eup %4390  ;;  %v804_v4 = vpop.permute.xlu1 %803 }
0x1572   :  { %807 = vst.msk [vmem:[#allocation3 + $0x18] sm:$0xf] %vm314_vm5, %v804_v4  ;;  %877 = vrot.lane.b32.xlu0 %v4391_v62, %s4542_s2 }
0x1576   :  { %393 = vrot.lane.b32.xlu0 %v4740_v18, %s4543_s4 }
0x157a   :  { %557 = vrot.lane.b32.xlu0 %v4786_v14, %s4543_s4 }
0x157e   :  { %721 = vrot.lane.b32.xlu0 %v4822_v6, %s4543_s4 }
0x15e4   :  { %v878_v20 = vpop.permute.xlu0 %877 }
0x15e5   :  { %v880_v30 = vmul.f32 %v878_v20, %v863_v59 }
0x15e7   :  { %v3878_v63 = vpack.c.bf16 %v880_v30, %v880_v30 }
0x15e8   :  { %v394_v0 = vpop.permute.xlu0 %393 }
0x15e9   :  { %397 = vst.msk [vmem:[#allocation3 + $0x4] sm:$0xf] %vm314_vm5, %v394_v0  ;;  %885 = vrot.lane.b32.xlu0 %v3878_v63, %s4543_s4 }
0x15ec   :  { %v558_v1 = vpop.permute.xlu0 %557 }
0x15ed   :  { %561 = vst.msk [vmem:[#allocation3 + $0xc] sm:$0xf] %vm314_vm5, %v558_v1 }
0x15f0   :  { %v722_v2 = vpop.permute.xlu0 %721  ;;  %v4211_v3 = vld [vmem:[#allocation3] sm:$0xff]  }
0x15f1   :  { %725 = vst.msk [vmem:[#allocation3 + $0x14] sm:$0xf] %vm314_vm5, %v722_v2  ;;  %4176 = vmatprep.mubr.msk.bf16.mxu0 %vm117_vm0, %v4211_v3 }
0x15f4   :  { %v4212_v18 = vld [vmem:[#allocation3 + $0x8] sm:$0xff]  }
0x15f5   :  { %4177 = vmatmul.mubr.msk.bf16.vlgmr.msra.gmra.mxu0 %vm117_vm0, %v4212_v18 }
0x15f8   :  { %v4213_v14 = vld [vmem:[#allocation3 + $0x10] sm:$0xff]  }
0x15f9   :  { %4180 = vmatprep.mubr.msk.bf16.mxu0 %vm117_vm0, %v4213_v14 }
0x165b   :  { %v886_v55 = vpop.permute.xlu0 %885 }
0x165c   :  { %889 = vst.msk [vmem:[#allocation3 + $0x1c] sm:$0xf] %vm314_vm5, %v886_v55 }
0x1663   :  { %v4214_v6 = vld [vmem:[#allocation3 + $0x18] sm:$0xff]  }
0x1664   :  { %4181 = vmatmul.mubr.msk.bf16.gmra.mxu0 %vm117_vm0, %v4214_v6 }
0x1665   :  { %1828 = vmatprep.mubr.bf16.mxu0 %v4541_v21 }
0x16b5   :  { %v4178_v7 = vpop.f32.mrf.mxu0 }
0x16b6   :  { %v996_v15 = vadd.f32 %v4178_v7, %v3668_v8 }
0x16b7   :  { %v987_v9 = vpop.f32.mrf.mxu0 }
0x16b8   :  { %v988_v10 = vadd.f32 %v3668_v8, %v987_v9 }
0x16b9   :  { %v4179_v11 = vpop.f32.mrf.mxu0 }
0x16ba   :  { %v999_v12 = vadd.f32 %v4179_v11, %v3668_v8  ;;  %4392 = vtanh.f32 %v988_v10 }
0x16bb   :  { %v990_v16 = vpop.f32.mrf.mxu0 }
0x16bc   :  { %v991_v17 = vadd.f32 %v3668_v8, %v990_v16  ;;  %4394 = vtanh.f32 %v999_v12 }
0x16be   :  { %4396 = vtanh.f32 %v991_v17 }
0x16bf   :  { %4398 = vtanh.f32 %v996_v15 }
0x16c7   :  { %v4393_v22 = vpop.eup %4392 }
0x16c9   :  { %v4395_v29 = vpop.eup %4394 }
0x16cb   :  { %v4397_v32 = vpop.eup %4396 }
0x16cc   :  { %v4399_v33 = vpop.eup %4398  ;;  %v1026_v34 = vpack.c.bf16 %v4397_v32, %v4393_v22 }
0x16cd   :  { %v1027_v23 = vpack.c.bf16 %v4395_v29, %v4399_v33 }
0x16ce   :  { %4186 = vmatprep.mubr.msk.bf16.mxu1 %vm1045_vm6, %v1026_v34 }
0x16cf   :  { %4187 = vmatmul.mubr.msk.bf16.vlgmr.msra.gmra.mxu1 %vm1045_vm6, %v1027_v23 }
0x1724   :  { %v4182_v35 = vpop.f32.mrf.mxu0 }
0x1725   :  { %v1012_v40 = vadd.f32 %v4182_v35, %v3668_v8 }
0x1726   :  { %v1003_v36 = vpop.f32.mrf.mxu0 }
0x1727   :  { %v1004_v37 = vadd.f32 %v3668_v8, %v1003_v36 }
0x1728   :  { %v4183_v38 = vpop.f32.mrf.mxu0 }
0x1729   :  { %v1015_v39 = vadd.f32 %v4183_v38, %v3668_v8  ;;  %4400 = vtanh.f32 %v1004_v37 }
0x172a   :  { %v1006_v24 = vpop.f32.mrf.mxu0 }
0x172b   :  { %v1007_v41 = vadd.f32 %v3668_v8, %v1006_v24  ;;  %4402 = vtanh.f32 %v1015_v39 }
0x172d   :  { %4404 = vtanh.f32 %v1007_v41 }
0x172e   :  { %4406 = vtanh.f32 %v1012_v40 }
0x1736   :  { %v4401_v43 = vpop.eup %4400 }
0x1738   :  { %v4403_v44 = vpop.eup %4402 }
0x173a   :  { %v4405_v26 = vpop.eup %4404 }
0x173b   :  { %v4407_v45 = vpop.eup %4406  ;;  %v1028_v46 = vpack.c.bf16 %v4405_v26, %v4401_v43 }
0x173c   :  { %v1029_v47 = vpack.c.bf16 %v4403_v44, %v4407_v45 }
0x173d   :  { %4190 = vmatprep.mubr.msk.bf16.mxu1 %vm1045_vm6, %v1028_v46 }
0x173e   :  { %4191 = vmatmul.mubr.msk.bf16.gmra.mxu1 %vm1045_vm6, %v1029_v47 }
0x173f   :  { %1869 = vmatprep.mubr.bf16.mxu1 %v4541_v21 }
0x178f   :  { %v4188_v49 = vpop.f32.mrf.mxu1 }
0x1790   :  { %v1101_v31 = vadd.f32 %v4188_v49, %v3679_v57 }
0x1791   :  { %v1092_v50 = vpop.f32.mrf.mxu1 }
0x1792   :  { %v1093_v42 = vadd.f32 %v3679_v57, %v1092_v50  ;;  %v1126_v63 = vsel %vm1123_vm7, %v1101_v31, -inf }
0x1793   :  { %v4189_v51 = vpop.f32.mrf.mxu1 }
0x1794   :  { %v1104_v58 = vadd.f32 %v4189_v51, %v3679_v57  ;;  %v1124_v0 = vsel %vm1123_vm7, %v1093_v42, -inf }
0x1795   :  { %v1095_v54 = vpop.f32.mrf.mxu1 }
0x1796   :  { %v1096_v19 = vadd.f32 %v3679_v57, %v1095_v54  ;;  %v1127_v53 = vsel %vm1123_vm7, %v1104_v58, -inf }
0x1798   :  { %v1125_v1 = vsel %vm1123_vm7, %v1096_v19, -inf }
0x17fe   :  { %v4192_v56 = vpop.f32.mrf.mxu1 }
0x17ff   :  { %v1117_v27 = vadd.f32 %v4192_v56, %v3679_v57 }
0x1800   :  { %v1108_v59 = vpop.f32.mrf.mxu1 }
0x1801   :  { %v1109_v60 = vadd.f32 %v3679_v57, %v1108_v59  ;;  %v1132_v48 = vsel %vm1123_vm7, %v1117_v27, -inf }
0x1802   :  { %v4193_v13 = vpop.f32.mrf.mxu1  ;;  %v1133_v3 = vmax.f32 %v1126_v63, %v1132_v48 }
0x1803   :  { %v1120_v61 = vadd.f32 %v4193_v13, %v3679_v57  ;;  %v1128_v62 = vsel %vm1123_vm7, %v1109_v60, -inf }
0x1804   :  { %v1111_v52 = vpop.f32.mrf.mxu1  ;;  %v1129_v18 = vmax.f32 %v1124_v0, %v1128_v62 }
0x1805   :  { %v1134_v4 = vsel %vm1123_vm7, %v1120_v61, -inf  ;;  %v1112_v20 = vadd.f32 %v3679_v57, %v1111_v52 }
0x1806   :  { %v1135_v30 = vmax.f32 %v1127_v53, %v1134_v4 }
0x1807   :  { %v1130_v2 = vsel %vm1123_vm7, %v1112_v20, -inf }
0x1808   :  { %v1131_v14 = vmax.f32 %v1125_v1, %v1130_v2  ;;  %v1137_v5 = vmax.f32 %v1133_v3, %v1135_v30 }
0x180a   :  { %v1136_v55 = vmax.f32 %v1129_v18, %v1131_v14  ;;  %v1533_v18 = vld [vmem:[%s5540_s9 + $0x80] sm:$0xff] }
0x180b   :  { %v1541_v14 = vld [vmem:[%s5540_s9 + $0xc0] sm:$0xff] }
0x180c   :  { %v1138_v6 = vmax.f32 %v1136_v55, %v1137_v5  ;;  %v1534_v5 = vld [vmem:[%s5540_s9 + $0x88] sm:$0xff]  ;;  %v3701_v55 = vcombine.low %v1533_v18, %v1541_v14 }
0x180e   :  { %v1139_v7 = vsub.f32 %v1093_v42, %v1138_v6  ;;  %v1141_v8 = vsub.f32 %v1101_v31, %v1138_v6  ;;  %v1140_v10 = vsub.f32 %v1096_v19, %v1138_v6  ;;  %v1142_v11 = vsub.f32 %v1104_v58, %v1138_v6 }
0x180f   :  { %v1143_v15 = vsub.f32 %v1109_v60, %v1138_v6  ;;  %v1144_v17 = vsub.f32 %v1112_v20, %v1138_v6  ;;  %v1145_v29 = vsub.f32 %v1117_v27, %v1138_v6  ;;  %v1146_v33 = vsub.f32 %v1120_v61, %v1138_v6 }
0x1810   :  { %v1147_v9 = vmul.f32 1.442695, %v1139_v7  ;;  %v1151_v12 = vmul.f32 1.442695, %v1141_v8  ;;  %v1149_v16 = vmul.f32 1.442695, %v1140_v10  ;;  %v3702_v6 = vcombine.high %v1533_v18, %v1541_v14 }
0x1811   :  { %v1153_v22 = vmul.f32 1.442695, %v1142_v11  ;;  %v1155_v32 = vmul.f32 1.442695, %v1143_v15  ;;  %v1157_v34 = vmul.f32 1.442695, %v1144_v17 }
0x1812   :  { %4408 = vpow2.f32 %v1147_v9  ;;  %v1159_v23 = vmul.f32 1.442695, %v1145_v29  ;;  %v1161_v35 = vmul.f32 1.442695, %v1146_v33  ;;  %v1542_v7 = vld [vmem:[%s5540_s9 + $0xc8] sm:$0xff]  ;;  %1808 = vmatprep.subr.bf16.mxu0 %v3702_v6  ;;  %v1517_v10 = vld [vmem:[%s5540_s9] sm:$0xff] }
0x1813   :  { %4410 = vpow2.f32 %v1151_v12  ;;  %v3703_v8 = vcombine.low %v1534_v5, %v1542_v7  ;;  %v3704_v9 = vcombine.high %v1534_v5, %v1542_v7  ;;  %1809 = vmatpush1.bf16.msra.mxu0 %v3701_v55  ;;  %v1525_v11 = vld [vmem:[%s5540_s9 + $0x40] sm:$0xff]  ;;  %v1518_v12 = vld [vmem:[%s5540_s9 + $0x8] sm:$0xff]  ;;  %v4948_v33 = vld [vmem:[%s5540_s9 + $0xd0] sm:$0xff] }
0x1814   :  { %4412 = vpow2.f32 %v1149_v16  ;;  %v3686_v15 = vcombine.high %v1517_v10, %v1525_v11  ;;  %v1526_v16 = vld [vmem:[%s5540_s9 + $0x48] sm:$0xff]  ;;  %v3685_v17 = vcombine.low %v1517_v10, %v1525_v11  ;;  %v1520_v18 = vld [vmem:[%s5540_s9 + $0x18] sm:$0xff] }
0x1815   :  { %4414 = vpow2.f32 %v1153_v22  ;;  %1849 = vmatprep.subr.bf16.mxu1 %v3704_v9  ;;  %v3687_v22 = vcombine.low %v1518_v12, %v1526_v16  ;;  %v3688_v29 = vcombine.high %v1518_v12, %v1526_v16  ;;  %v1528_v14 = vld [vmem:[%s5540_s9 + $0x58] sm:$0xff]  ;;  %v1545_v9 = vld [vmem:[%s5540_s9 + $0xe0] sm:$0xff]  ;;  %v1538_v10 = vld [vmem:[%s5540_s9 + $0xa8] sm:$0xff] }
0x1816   :  { %4416 = vpow2.f32 %v1155_v32  ;;  %1850 = vmatpush1.bf16.msra.mxu1 %v3703_v8  ;;  %1810 = vmatprep.subr.bf16.mxu0 %v3686_v15  ;;  %v4943_v32 = vld [vmem:[%s5540_s9 + $0x90] sm:$0xff]  ;;  %v3692_v7 = vcombine.high %v1520_v18, %v1528_v14  ;;  %v1537_v8 = vld [vmem:[%s5540_s9 + $0xa0] sm:$0xff]  ;;  %v1546_v11 = vld [vmem:[%s5540_s9 + $0xe8] sm:$0xff]  ;;  %v3691_v15 = vcombine.low %v1520_v18, %v1528_v14 }
0x1817   :  { %4418 = vpow2.f32 %v1157_v34  ;;  %1811 = vmatpush1.bf16.msra.mxu0 %v3685_v17  ;;  %1851 = vmatprep.subr.bf16.mxu1 %v3688_v29  ;;  %v4953_v34 = vld [vmem:[%s5540_s9 + $0x98] sm:$0xff]  ;;  %v3710_v16 = vcombine.high %v1537_v8, %v1545_v9  ;;  %v3712_v17 = vcombine.high %v1538_v10, %v1546_v11  ;;  %v1529_v29 = vld [vmem:[%s5540_s9 + $0x60] sm:$0xff]  ;;  %v4238_v18 = vld [vmem:[%s5542_s11 + $0x10] sm:$0xff]  }
0x1818   :  { %4420 = vpow2.f32 %v1159_v23  ;;  %v3706_v23 = vcombine.high %v4943_v32, %v4948_v33  ;;  %v4239_v14 = vld [vmem:[%s5542_s11 + $0x90] sm:$0xff]  }
0x1819   :  { %4422 = vpow2.f32 %v1161_v35  ;;  %v4960_v35 = vld [vmem:[%s5540_s9 + $0xd8] sm:$0xff] }
0x181a   :  { %1852 = vmatpush1.bf16.msra.mxu1 %v3687_v22  ;;  %1890 = vmatprep.subr.bf16.mxu0 %v3706_v23  ;;  %v1521_v22 = vld [vmem:[%s5540_s9 + $0x20] sm:$0xff]  ;;  %v3711_v23 = vcombine.low %v1538_v10, %v1546_v11 }
0x181b   :  { %v4246_v10 = vld [vmem:[%s5542_s11] sm:$0xff]  }
0x181c   :  { %v4247_v11 = vld [vmem:[%s5542_s11 + $0x80] sm:$0xff]  }
0x181f   :  { %v4409_v36 = vpop.eup %4408 }
0x1820   :  { %v4411_v37 = vpop.eup %4410  ;;  %v1163_v38 = vsel %vm1123_vm7, %v4409_v36, 0.0 }
0x1821   :  { %v4413_v39 = vpop.eup %4412  ;;  %v1166_v43 = vsel %vm1123_vm7, %v4411_v37, 0.0 }
0x1822   :  { %v1164_v40 = vsel %vm1123_vm7, %v4413_v39, 0.0  ;;  %v4415_v24 = vpop.eup %4414 }
0x1823   :  { %v1165_v41 = vadd.f32 %v1164_v40, %v1163_v38  ;;  %v4417_v44 = vpop.eup %4416  ;;  %v1168_v45 = vsel %vm1123_vm7, %v4415_v24, 0.0  ;;  %v3708_v38 = vcombine.high %v4953_v34, %v4960_v35  ;;  %v1224_v40 = vld [vmem:[#allocation3] ss:$28 sps:$4 sm:$0xff]  }
0x1824   :  { %v4419_v46 = vpop.eup %4418  ;;  %v1170_v49 = vsel %vm1123_vm7, %v4417_v44, 0.0 }
0x1825   :  { %v1167_v26 = vadd.f32 %v1166_v43, %v1165_v41  ;;  %v4421_v50 = vpop.eup %4420  ;;  %v1172_v54 = vsel %vm1123_vm7, %v4419_v46, 0.0  ;;  %1931 = vmatprep.subr.bf16.mxu1 %v3708_v38  ;;  %v1225_v41 = vunpack.c.l.bf16 %v1224_v40  ;;  %v1547_v38 = vld [vmem:[%s5540_s9 + $0xf0] sm:$0xff] }
0x1826   :  { %v4423_v56 = vpop.eup %4422  ;;  %v1174_v58 = vsel %vm1123_vm7, %v4421_v50, 0.0 }
0x1827   :  { %v1169_v47 = vadd.f32 %v1168_v45, %v1167_v26  ;;  %v1176_v27 = vsel %vm1123_vm7, %v4423_v56, 0.0 }
0x1829   :  { %v1171_v51 = vadd.f32 %v1170_v49, %v1169_v47 }
0x182b   :  { %v1173_v57 = vadd.f32 %v1172_v54, %v1171_v51 }
0x182d   :  { %v1175_v59 = vadd.f32 %v1174_v58, %v1173_v57  ;;  %v1429_v57 = vld [vmem:[#allocation3 + $0x14] sm:$0xff]  }
0x182f   :  { %v1177_v60 = vadd.f32 %v1176_v27, %v1175_v59 }
0x1831   :  { %4424 = vrcp.f32 %v1177_v60 }
0x183e   :  { %v4425_v13 = vpop.eup %4424 }
0x183f   :  { %v1180_v31 = vmul.f32 %v4425_v13, %v4413_v39  ;;  %v1179_v42 = vmul.f32 %v4425_v13, %v4409_v36  ;;  %v1181_v53 = vmul.f32 %v4425_v13, %v4411_v37  ;;  %v1182_v52 = vmul.f32 %v4425_v13, %v4415_v24  ;;  %v1265_v39 = vld [vmem:[#allocation3 + $0x4] sm:$0xff]  }
0x1840   :  { %v1183_v4 = vmul.f32 %v4425_v13, %v4417_v44  ;;  %v1184_v20 = vmul.f32 %v4425_v13, %v4419_v46  ;;  %v1185_v0 = vmul.f32 %v4425_v13, %v4421_v50  ;;  %v1186_v1 = vmul.f32 %v4425_v13, %v4423_v56  ;;  %v1347_v46 = vld [vmem:[#allocation3 + $0xc] sm:$0xff]  }
0x1841   :  { %v1262_v19 = vsel %vm1123_vm7, %v1180_v31, 0.0  ;;  %v1221_v61 = vsel %vm1123_vm7, %v1179_v42, 0.0  ;;  %v1303_v48 = vsel %vm1123_vm7, %v1181_v53, 0.0  ;;  %v1344_v62 = vsel %vm1123_vm7, %v1182_v52, 0.0 }
0x1842   :  { %1263 = vadd.xlane.f32.xlu0 %v1262_v19  ;;  %1222 = vadd.xlane.f32.xlu1 %v1221_v61  ;;  %v1385_v30 = vsel %vm1123_vm7, %v1183_v4, 0.0  ;;  %v1426_v63 = vsel %vm1123_vm7, %v1184_v20, 0.0  ;;  %v1467_v2 = vsel %vm1123_vm7, %v1185_v0, 0.0  ;;  %v1508_v3 = vsel %vm1123_vm7, %v1186_v1, 0.0 }
0x1843   :  { %v3705_v36 = vcombine.low %v4943_v32, %v4948_v33  ;;  %v3707_v37 = vcombine.low %v4953_v34, %v4960_v35  ;;  %v1266_v24 = vunpack.c.l.bf16 %v1265_v39  ;;  %v1307_v47 = vunpack.c.h.bf16 %v1265_v39  ;;  %v1522_v32 = vld [vmem:[%s5540_s9 + $0x28] sm:$0xff]  ;;  %v1540_v39 = vld [vmem:[%s5540_s9 + $0xb8] sm:$0xff] }
0x1844   :  { %v1348_v56 = vunpack.c.l.bf16 %v1347_v46  ;;  %v1389_v27 = vunpack.c.h.bf16 %v1347_v46  ;;  %v1430_v19 = vunpack.c.l.bf16 %v1429_v57  ;;  %v1530_v33 = vld [vmem:[%s5540_s9 + $0x68] sm:$0xff]  ;;  %v3709_v34 = vcombine.low %v1537_v8, %v1545_v9  ;;  %v1524_v46 = vld [vmem:[%s5540_s9 + $0x38] sm:$0xff]  ;;  %v4244_v8 = vld [vmem:[%s5542_s11 + $0x40] sm:$0xff]  }
0x1845   :  { %v3694_v35 = vcombine.high %v1521_v22, %v1529_v29  ;;  %v4245_v9 = vld [vmem:[%s5542_s11 + $0xc0] sm:$0xff]  }
0x1846   :  { %1304 = vadd.xlane.f32.xlu0 %v1303_v48  ;;  %1345 = vadd.xlane.f32.xlu1 %v1344_v62 }
0x184a   :  { %1386 = vadd.xlane.f32.xlu0 %v1385_v30  ;;  %1427 = vadd.xlane.f32.xlu1 %v1426_v63  ;;  %v1512_v30 = vunpack.c.h.bf16 %v1224_v40  ;;  %v1548_v40 = vld [vmem:[%s5540_s9 + $0xf8] sm:$0xff] }
0x184e   :  { %1468 = vadd.xlane.f32.xlu0 %v1467_v2  ;;  %1509 = vadd.xlane.f32.xlu1 %v1508_v3  ;;  %v1519_v2 = vld [vmem:[%s5540_s9 + $0x10] sm:$0xff] }
0x184f   :  { %v1527_v3 = vld [vmem:[%s5540_s9 + $0x50] sm:$0xff] }
0x1850   :  { %v3690_v6 = vcombine.high %v1519_v2, %v1527_v3  ;;  %v3689_v12 = vcombine.low %v1519_v2, %v1527_v3  ;;  %v4236_v2 = vld [vmem:[%s5542_s11 + $0x50] sm:$0xff]  }
0x1851   :  { %v4237_v3 = vld [vmem:[%s5542_s11 + $0xd0] sm:$0xff]  }
0x187b   :  { %1187 = vxpose.xlu0.b32.start.end [1/1] (short) (narrow) %v1179_v42, 8 }
0x187f   :  { %1269 = vxpose.xlu0.b32.start.end [1/1] (short) (narrow) %v1181_v53, 8 }
0x1881   :  { %1228 = vxpose.xlu1.b32.start.end [1/1] (short) (narrow) %v1180_v31, 8 }
0x1883   :  { %1310 = vxpose.xlu0.b32.start.end [1/1] (short) (narrow) %v1182_v52, 8  ;;  %v1471_v52 = vunpack.c.h.bf16 %v1429_v57 }
0x1885   :  { %1351 = vxpose.xlu1.b32.start.end [1/1] (short) (narrow) %v1183_v4, 8 }
0x1887   :  { %1392 = vxpose.xlu0.b32.start.end [1/1] (short) (narrow) %v1184_v20, 8 }
0x1889   :  { %1433 = vxpose.xlu1.b32.start.end [1/1] (short) (narrow) %v1185_v0, 8 }
0x188b   :  { %1474 = vxpose.xlu0.b32.start.end [1/1] (short) (narrow) %v1186_v1, 8 }
0x18cb   :  { %v1264_v43 = vpop.xlane.xlu0 %1263  ;;  %v1223_v44 = vpop.xlane.xlu1 %1222 }
0x18cc   :  { %v1267_v26 = vmul.f32 %v1266_v24, %v1264_v43  ;;  %v1226_v45 = vmul.f32 %v1225_v41, %v1223_v44  ;;  %v3693_v24 = vcombine.low %v1521_v22, %v1529_v29  ;;  %v3695_v41 = vcombine.low %v1522_v32, %v1530_v33 }
0x18cd   :  { %v3716_v44 = vcombine.high %v1540_v39, %v1548_v40  ;;  %v1559_v22 = vsub.s32 1, %v4687_v25  ;;  %v1567_v29 = vsub.s32 3, %v4687_v25 }
0x18ce   :  { %v1268_v51 = vadd.f32 %v1267_v26, %v1226_v45  ;;  %v1523_v26 = vld [vmem:[%s5540_s9 + $0x30] sm:$0xff] }
0x18cf   :  { %v1305_v49 = vpop.xlane.xlu0 %1304  ;;  %v1346_v50 = vpop.xlane.xlu1 %1345  ;;  %v1531_v45 = vld [vmem:[%s5540_s9 + $0x70] sm:$0xff] }
0x18d0   :  { %v1308_v54 = vmul.f32 %v1307_v47, %v1305_v49  ;;  %v1349_v59 = vmul.f32 %v1348_v56, %v1346_v50  ;;  %v1532_v47 = vld [vmem:[%s5540_s9 + $0x78] sm:$0xff]  ;;  %v3715_v50 = vcombine.low %v1540_v39, %v1548_v40  ;;  %v3697_v56 = vcombine.low %v1523_v26, %v1531_v45 }
0x18d1   :  { %v3699_v57 = vcombine.low %v1524_v46, %v1532_v47 }
0x18d2   :  { %v1309_v58 = vadd.f32 %v1308_v54, %v1268_v51  ;;  %v3698_v51 = vcombine.high %v1523_v26, %v1531_v45  ;;  %v3700_v54 = vcombine.high %v1524_v46, %v1532_v47 }
0x18d3   :  { %v1387_v60 = vpop.xlane.xlu0 %1386  ;;  %v1428_v13 = vpop.xlane.xlu1 %1427 }
0x18d4   :  { %v1350_v31 = vadd.f32 %v1349_v59, %v1309_v58  ;;  %v1390_v42 = vmul.f32 %v1389_v27, %v1387_v60  ;;  %v1431_v53 = vmul.f32 %v1430_v19, %v1428_v13  ;;  %v4216_v58 = vld [vmem:[%s5542_s11 + $0x78] sm:$0xff]   ;;  %v4220_v60 = vld [vmem:[%s5542_s11 + $0x70] sm:$0xff]   ;;  %v4224_v19 = vld [vmem:[%s5542_s11 + $0x68] sm:$0xff]  }
0x18d5   :  { %v4217_v59 = vld [vmem:[%s5542_s11 + $0xf8] sm:$0xff]   ;;  %v4221_v13 = vld [vmem:[%s5542_s11 + $0xf0] sm:$0xff]  }
0x18d6   :  { %v1391_v61 = vadd.f32 %v1390_v42, %v1350_v31  ;;  %v4219_v27 = vld [vmem:[%s5542_s11 + $0xb8] sm:$0xff]   ;;  %v4222_v31 = vld [vmem:[%s5542_s11 + $0x30] sm:$0xff]  }
0x18d7   :  { %v1469_v48 = vpop.xlane.xlu0 %1468  ;;  %v1510_v62 = vpop.xlane.xlu1 %1509  ;;  %v4223_v42 = vld [vmem:[%s5542_s11 + $0xb0] sm:$0xff]  }
0x18d8   :  { %v1432_v4 = vadd.f32 %v1431_v53, %v1391_v61  ;;  %v1472_v20 = vmul.f32 %v1471_v52, %v1469_v48  ;;  %v1513_v0 = vmul.f32 %v1512_v30, %v1510_v62  ;;  %v4225_v61 = vld [vmem:[%s5542_s11 + $0xe8] sm:$0xff]   ;;  %v4228_v48 = vld [vmem:[%s5542_s11 + $0x60] sm:$0xff]   ;;  %v4232_v30 = vld [vmem:[%s5542_s11 + $0x58] sm:$0xff]  }
0x18d9   :  { %v4226_v53 = vld [vmem:[%s5542_s11 + $0x28] sm:$0xff]   ;;  %v4229_v62 = vld [vmem:[%s5542_s11 + $0xe0] sm:$0xff]  }
0x18da   :  { %v1473_v63 = vadd.f32 %v1472_v20, %v1432_v4  ;;  %v4227_v52 = vld [vmem:[%s5542_s11 + $0xa8] sm:$0xff]   ;;  %v4230_v4 = vld [vmem:[%s5542_s11 + $0x20] sm:$0xff]  }
0x18db   :  { %v4231_v20 = vld [vmem:[%s5542_s11 + $0xa0] sm:$0xff]  }
0x18dc   :  { %v1514_v1 = vadd.f32 %v1513_v0, %v1473_v63  ;;  %v4233_v63 = vld [vmem:[%s5542_s11 + $0xd8] sm:$0xff]  }
0x18dd   :  { %v4234_v0 = vld [vmem:[%s5542_s11 + $0x18] sm:$0xff]  }
0x18de   :  { %v1515_v5 = vmul.f32 0.25, %v1514_v1  ;;  %v4235_v1 = vld [vmem:[%s5542_s11 + $0x98] sm:$0xff]  }
0x18e0   :  { %v4980_v55 = vpack.c.bf16 %v1515_v5, %v1515_v5  ;;  %v4240_v5 = vld [vmem:[%s5542_s11 + $0x48] sm:$0xff]  }
0x18e2   :  { %3717 = vmatmul.mubr.msk.bf16.vlgmr.msra.gmra.mxu0 %vm117_vm0, %v4980_v55  ;;  %3718 = vmatmul.mubr.msk.bf16.vlgmr.msra.gmra.mxu1 %vm117_vm0, %v4980_v55 }
0x18e3   :  { %1891 = vmatpush1.bf16.msra.mxu0 %v3705_v36  ;;  %1932 = vmatpush1.bf16.msra.mxu1 %v3707_v37  ;;  %v3696_v36 = vcombine.high %v1522_v32, %v1530_v33  ;;  %v1539_v37 = vld [vmem:[%s5540_s9 + $0xb0] sm:$0xff] }
0x18e4   :  { %1892 = vmatprep.subr.bf16.mxu0 %v3690_v6  ;;  %1933 = vmatprep.subr.bf16.mxu1 %v3692_v7  ;;  %v3714_v43 = vcombine.high %v1539_v37, %v1547_v38  ;;  %v3713_v49 = vcombine.low %v1539_v37, %v1547_v38  ;;  %v4242_v6 = vld [vmem:[%s5542_s11 + $0x8] sm:$0xff]  }
0x18e5   :  { %1910 = vmatprep.mubr.bf16.mxu0 %v4541_v21  ;;  %1951 = vmatprep.mubr.bf16.mxu1 %v4541_v21  ;;  %v4243_v7 = vld [vmem:[%s5542_s11 + $0x88] sm:$0xff]  }
0x18e7   :  { %1893 = vmatpush1.bf16.msra.mxu0 %v3689_v12  ;;  %1934 = vmatpush1.bf16.msra.mxu1 %v3691_v15  ;;  %v4248_v12 = vld [vmem:[%s5542_s11 + $0x178] sm:$0xff]  }
0x18e8   :  { %1972 = vmatprep.subr.bf16.mxu0 %v3710_v16  ;;  %2013 = vmatprep.subr.bf16.mxu1 %v3712_v17  ;;  %v4249_v15 = vld [vmem:[%s5542_s11 + $0x1f8] sm:$0xff]   ;;  %v1563_v16 = vsub.s32 2, %v4687_v25  ;;  %v5158_v17 = vld [vmem:[%s5541_s10] sm:$0xff] }
0x18e9   :  { %v1556_v32 = vrot.slane %v5158_v17, %v4693_v28 }
0x18ea   :  { %3719 = vmatmul.mubr.msk.bf16.vlgmr.msra.gmra.mxu0 %vm117_vm0, %v4980_v55  ;;  %3720 = vmatmul.mubr.msk.bf16.vlgmr.msra.gmra.mxu1 %vm117_vm0, %v4980_v55  ;;  %v1564_v33 = vrot.slane %v5158_v17, %v1563_v16 }
0x18eb   :  { %1973 = vmatpush1.bf16.msra.mxu0 %v3709_v34  ;;  %2014 = vmatpush1.bf16.msra.mxu1 %v3711_v23  ;;  %v1560_v34 = vrot.slane %v5158_v17, %v1559_v22  ;;  %v1568_v23 = vrot.slane %v5158_v17, %v1567_v29 }
0x18ec   :  { %1974 = vmatprep.subr.bf16.mxu0 %v3694_v35  ;;  %2015 = vmatprep.subr.bf16.mxu1 %v3696_v36 }
0x18ed   :  { %1992 = vmatprep.mubr.bf16.mxu0 %v4541_v21  ;;  %2033 = vmatprep.mubr.bf16.mxu1 %v4541_v21 }
0x18ef   :  { %1975 = vmatpush1.bf16.msra.mxu0 %v3693_v24  ;;  %2016 = vmatpush1.bf16.msra.mxu1 %v3695_v41  ;;  %v1575_v24 = vsub.s32 5, %v4687_v25  ;;  %v1583_v41 = vsub.s32 7, %v4687_v25 }
0x18f0   :  { %2054 = vmatprep.subr.bf16.mxu0 %v3714_v43  ;;  %2095 = vmatprep.subr.bf16.mxu1 %v3716_v44 }
0x18f2   :  { %3721 = vmatmul.mubr.msk.bf16.vlgmr.msra.gmra.mxu0 %vm117_vm0, %v4980_v55  ;;  %3722 = vmatmul.mubr.msk.bf16.vlgmr.msra.gmra.mxu1 %vm117_vm0, %v4980_v55 }
0x18f3   :  { %2055 = vmatpush1.bf16.msra.mxu0 %v3713_v49  ;;  %2096 = vmatpush1.bf16.msra.mxu1 %v3715_v50 }
0x18f4   :  { %2056 = vmatprep.subr.bf16.mxu0 %v3698_v51  ;;  %2097 = vmatprep.subr.bf16.mxu1 %v3700_v54 }
0x18f5   :  { %2074 = vmatprep.mubr.bf16.mxu0 %v4541_v21  ;;  %2115 = vmatprep.mubr.bf16.mxu1 %v4541_v21  ;;  %v4218_v21 = vld [vmem:[%s5542_s11 + $0x38] sm:$0xff]  }
0x18f7   :  { %2057 = vmatpush1.bf16.msra.mxu0 %v3697_v56  ;;  %2098 = vmatpush1.bf16.msra.mxu1 %v3699_v57  ;;  %v1576_v56 = vrot.slane %v5158_v17, %v1575_v24  ;;  %v1584_v57 = vrot.slane %v5158_v17, %v1583_v41 }
0x18f8   :  { %3920 = vmatprep.subr.bf16.mxu0 %v4216_v58  ;;  %3942 = vmatprep.subr.bf16.mxu1 %v4217_v59 }
0x18fa   :  { %3723 = vmatmul.mubr.msk.bf16.vlgmr.msra.gmra.mxu0 %vm117_vm0, %v4980_v55  ;;  %3724 = vmatmul.mubr.msk.bf16.vlgmr.msra.gmra.mxu1 %vm117_vm0, %v4980_v55  ;;  %v4241_v55 = vld [vmem:[%s5542_s11 + $0xc8] sm:$0xff]  }
0x18fb   :  { %3921 = vmatpush3.bf16.msra.mxu0 %v4218_v21  ;;  %3943 = vmatpush3.bf16.msra.mxu1 %v4219_v27 }
0x18fc   :  { %3922 = vmatprep.subr.bf16.mxu0 %v4220_v60  ;;  %3944 = vmatprep.subr.bf16.mxu1 %v4221_v13 }
0x18ff   :  { %3923 = vmatpush3.bf16.msra.mxu0 %v4222_v31  ;;  %3945 = vmatpush3.bf16.msra.mxu1 %v4223_v42 }
0x1900   :  { %3924 = vmatprep.subr.bf16.mxu0 %v4224_v19  ;;  %3946 = vmatprep.subr.bf16.mxu1 %v4225_v61 }
0x1903   :  { %3925 = vmatpush3.bf16.msra.mxu0 %v4226_v53  ;;  %3947 = vmatpush3.bf16.msra.mxu1 %v4227_v52 }
0x1904   :  { %3926 = vmatprep.subr.bf16.mxu0 %v4228_v48  ;;  %3948 = vmatprep.subr.bf16.mxu1 %v4229_v62 }
0x1907   :  { %3927 = vmatpush3.bf16.msra.mxu0 %v4230_v4  ;;  %3949 = vmatpush3.bf16.msra.mxu1 %v4231_v20  ;;  %v1571_v20 = vsub.s32 4, %v4687_v25 }
0x1908   :  { %3928 = vmatprep.subr.bf16.mxu0 %v4232_v30  ;;  %3950 = vmatprep.subr.bf16.mxu1 %v4233_v63 }
0x190b   :  { %3929 = vmatpush3.bf16.msra.mxu0 %v4234_v0  ;;  %3951 = vmatpush3.bf16.msra.mxu1 %v4235_v1 }
0x190c   :  { %3930 = vmatprep.subr.bf16.mxu0 %v4236_v2  ;;  %3952 = vmatprep.subr.bf16.mxu1 %v4237_v3  ;;  %v1579_v2 = vsub.s32 6, %v4687_v25 }
0x190f   :  { %3931 = vmatpush3.bf16.msra.mxu0 %v4238_v18  ;;  %3953 = vmatpush3.bf16.msra.mxu1 %v4239_v14  ;;  %v5190_v14 = vld [vmem:[%s5541_s10 + $0x8] sm:$0xff] }
0x1910   :  { %3932 = vmatprep.subr.bf16.mxu0 %v4240_v5  ;;  %3954 = vmatprep.subr.bf16.mxu1 %v4241_v55 }
0x1913   :  { %3933 = vmatpush3.bf16.msra.mxu0 %v4242_v6  ;;  %3955 = vmatpush3.bf16.msra.mxu1 %v4243_v7 }
0x1914   :  { %3934 = vmatprep.subr.bf16.mxu0 %v4244_v8  ;;  %3956 = vmatprep.subr.bf16.mxu1 %v4245_v9  ;;  %v1604_v8 = vrot.slane %v5190_v14, %v1571_v20  ;;  %v1612_v9 = vrot.slane %v5190_v14, %v1579_v2 }
0x1917   :  { %3935 = vmatpush3.bf16.msra.mxu0 %v4246_v10  ;;  %3957 = vmatpush3.bf16.msra.mxu1 %v4247_v11  ;;  %v1572_v11 = vrot.slane %v5158_v17, %v1571_v20  ;;  %v4255_v20 = vld [vmem:[%s5542_s11 + $0x1b0] sm:$0xff]  }
0x1918   :  { %3964 = vmatprep.subr.bf16.mxu0 %v4248_v12  ;;  %3986 = vmatprep.subr.bf16.mxu1 %v4249_v15 }
0x19a2   :  { %v1830_v35 = vpop.f32.mrf.mxu0  ;;  %v1871_v36 = vpop.f32.mrf.mxu1 }
0x19a3   :  { %v1831_v37 = vadd.f32 %v1830_v35, %v1556_v32  ;;  %v1872_v38 = vadd.f32 %v1871_v36, %v1564_v33  ;;  %v1580_v32 = vrot.slane %v5158_v17, %v1579_v2  ;;  %v1592_v33 = vrot.slane %v5190_v14, %v1559_v22 }
0x19a4   :  { %v1832_v39 = vpop.f32.mrf.mxu0  ;;  %v1873_v40 = vpop.f32.mrf.mxu1  ;;  %v1600_v35 = vrot.slane %v5190_v14, %v1567_v29 }
0x19a5   :  { %v3725_v43 = vmul.f32 -1.442695, %v1831_v37  ;;  %v3727_v44 = vmul.f32 -1.442695, %v1872_v38  ;;  %v1833_v26 = vadd.f32 %v1832_v39, %v1560_v34  ;;  %v1874_v45 = vadd.f32 %v1873_v40, %v1568_v23 }
0x19a6   :  { %v1834_v46 = vpop.f32.mrf.mxu0  ;;  %v1875_v47 = vpop.f32.mrf.mxu1 }
0x19a7   :  { %4426 = vpow2.f32 %v3725_v43  ;;  %v3726_v49 = vmul.f32 -1.442695, %v1833_v26  ;;  %v3728_v50 = vmul.f32 -1.442695, %v1874_v45 }
0x19a8   :  { %4428 = vpow2.f32 %v3727_v44  ;;  %v1835_v51 = vpop.f32.mrf.mxu0  ;;  %v1876_v54 = vpop.f32.mrf.mxu1 }
0x19a9   :  { %4430 = vpow2.f32 %v3726_v49 }
0x19aa   :  { %4432 = vpow2.f32 %v3728_v50  ;;  %v1912_v58 = vpop.f32.mrf.mxu0  ;;  %v1953_v59 = vpop.f32.mrf.mxu1 }
0x19ab   :  { %v1913_v38 = vadd.f32 %v1912_v58, %v1572_v11  ;;  %v1954_v17 = vadd.f32 %v1953_v59, %v1580_v32  ;;  %v4264_v32 = vld [vmem:[%s5542_s11 + $0x158] sm:$0xff]  }
0x19ac   :  { %v1914_v21 = vpop.f32.mrf.mxu0  ;;  %v1955_v27 = vpop.f32.mrf.mxu1 }
0x19ad   :  { %v1915_v60 = vadd.f32 %v1914_v21, %v1576_v56  ;;  %v1956_v13 = vadd.f32 %v1955_v27, %v1584_v57  ;;  %v3729_v49 = vmul.f32 -1.442695, %v1913_v38  ;;  %v3731_v54 = vmul.f32 -1.442695, %v1954_v17  ;;  %v4266_v38 = vld [vmem:[%s5542_s11 + $0x118] sm:$0xff]  }
0x19ae   :  { %v1916_v31 = vpop.f32.mrf.mxu0  ;;  %v1957_v42 = vpop.f32.mrf.mxu1  ;;  %v1588_v17 = vrot.slane %v5190_v14, %v4693_v28  ;;  %v4269_v28 = vld [vmem:[%s5542_s11 + $0x1d0] sm:$0xff]  }
0x19af   :  { %v3730_v19 = vmul.f32 -1.442695, %v1915_v60  ;;  %v3732_v61 = vmul.f32 -1.442695, %v1956_v13  ;;  %v4250_v13 = vld [vmem:[%s5542_s11 + $0x138] sm:$0xff]  }
0x19b0   :  { %v1917_v53 = vpop.f32.mrf.mxu0  ;;  %v1958_v52 = vpop.f32.mrf.mxu1 }
0x19b1   :  { %4434 = vpow2.f32 %v3730_v19  ;;  %v4251_v19 = vld [vmem:[%s5542_s11 + $0x1b8] sm:$0xff]   ;;  %v4253_v52 = vld [vmem:[%s5542_s11 + $0x1f0] sm:$0xff]  }
0x19b2   :  { %4436 = vpow2.f32 %v3732_v61  ;;  %v5181_v48 = vpop.f32.mrf.mxu0  ;;  %v5183_v62 = vpop.f32.mrf.mxu1  ;;  %v4252_v61 = vld [vmem:[%s5542_s11 + $0x170] sm:$0xff]  }
0x19b4   :  { %v4427_v4 = vpop.eup %4426  ;;  %v1996_v30 = vpop.f32.mrf.mxu0 }
0x19b5   :  { %v2037_v63 = vpop.f32.mrf.mxu1  ;;  %v4429_v0 = vpop.eup %4428  ;;  %v2172_v1 = vadd.f32 1.0, %v4427_v4  ;;  %v1997_v44 = vadd.f32 %v1996_v30, %v1592_v33  ;;  %v4254_v4 = vld [vmem:[%s5542_s11 + $0x130] sm:$0xff]   ;;  %v4256_v30 = vld [vmem:[%s5542_s11 + $0x168] sm:$0xff]  }
0x19b6   :  { %v4431_v3 = vpop.eup %4430  ;;  %v2174_v18 = vadd.f32 1.0, %v4429_v0  ;;  %v1998_v5 = vpop.f32.mrf.mxu0  ;;  %v2038_v47 = vadd.f32 %v2037_v63, %v1600_v35  ;;  %v4257_v63 = vld [vmem:[%s5542_s11 + $0x1e8] sm:$0xff]  }
0x19b7   :  { %v2039_v55 = vpop.f32.mrf.mxu1  ;;  %v4433_v6 = vpop.eup %4432  ;;  %4438 = vrcp.f32 %v2172_v1  ;;  %v2173_v7 = vadd.f32 1.0, %v4431_v3  ;;  %v3734_v56 = vmul.f32 -1.442695, %v1997_v44  ;;  %v4258_v3 = vld [vmem:[%s5542_s11 + $0x128] sm:$0xff]   ;;  %v4268_v44 = vld [vmem:[%s5542_s11 + $0x150] sm:$0xff]  }
0x19b8   :  { %4440 = vrcp.f32 %v2174_v18  ;;  %v2175_v10 = vadd.f32 1.0, %v4433_v6  ;;  %v1999_v12 = vpop.f32.mrf.mxu0  ;;  %v3736_v57 = vmul.f32 -1.442695, %v2038_v47  ;;  %v4259_v5 = vld [vmem:[%s5542_s11 + $0x1a8] sm:$0xff]   ;;  %v4260_v55 = vld [vmem:[%s5542_s11 + $0x160] sm:$0xff]   ;;  %v4271_v47 = vld [vmem:[%s5542_s11 + $0x190] sm:$0xff]  }
0x19b9   :  { %v2040_v15 = vpop.f32.mrf.mxu1  ;;  %4442 = vrcp.f32 %v2173_v7  ;;  %v4261_v7 = vld [vmem:[%s5542_s11 + $0x1e0] sm:$0xff]  }
0x19ba   :  { %4444 = vrcp.f32 %v2175_v10  ;;  %v2076_v34 = vpop.f32.mrf.mxu0  ;;  %v4262_v10 = vld [vmem:[%s5542_s11 + $0x120] sm:$0xff]  }
0x19bb   :  { %v2117_v23 = vpop.f32.mrf.mxu1  ;;  %v5202_v36 = vadd.f32 %v2076_v34, %v1604_v8  ;;  %v4263_v15 = vld [vmem:[%s5542_s11 + $0x1a0] sm:$0xff]   ;;  %v4265_v34 = vld [vmem:[%s5542_s11 + $0x1d8] sm:$0xff]  }
0x19bc   :  { %v5204_v37 = vadd.f32 %v2117_v23, %v1612_v9  ;;  %v5206_v39 = vpop.f32.mrf.mxu0 }
0x19bd   :  { %v5208_v40 = vpop.f32.mrf.mxu1 }
0x19be   :  { %v4435_v43 = vpop.eup %4434  ;;  %v2080_v26 = vpop.f32.mrf.mxu0 }
0x19bf   :  { %v2121_v22 = vpop.f32.mrf.mxu1  ;;  %v4437_v45 = vpop.eup %4436  ;;  %v2177_v46 = vadd.f32 1.0, %v4435_v43  ;;  %v4267_v43 = vld [vmem:[%s5542_s11 + $0x198] sm:$0xff]   ;;  %v1596_v26 = vrot.slane %v5190_v14, %v1563_v16  ;;  %v4270_v16 = vld [vmem:[%s5542_s11 + $0x110] sm:$0xff]  }
0x19c0   :  { %v2179_v50 = vadd.f32 1.0, %v4437_v45  ;;  %v2081_v29 = vpop.f32.mrf.mxu0  ;;  %v1608_v22 = vrot.slane %v5190_v14, %v1575_v24  ;;  %v1616_v45 = vrot.slane %v5190_v14, %v1583_v41  ;;  %v4272_v24 = vld [vmem:[%s5542_s11 + $0x148] sm:$0xff]  }
0x19c1   :  { %v2122_v51 = vpop.f32.mrf.mxu1  ;;  %4446 = vrcp.f32 %v2177_v46  ;;  %v1995_v46 = vadd.f32 %v5181_v48, %v1588_v17  ;;  %v2036_v25 = vadd.f32 %v5183_v62, %v1596_v26  ;;  %v4273_v41 = vld [vmem:[%s5542_s11 + $0x1c8] sm:$0xff]   ;;  %v4276_v29 = vld [vmem:[%s5542_s11 + $0x140] sm:$0xff]   ;;  %v4301_v17 = vld [vmem:[%s5542_s11 + $0x2d0] sm:$0xff]  }
0x19c2   :  { %4448 = vrcp.f32 %v2179_v50  ;;  %v2079_v14 = vadd.f32 %v5206_v39, %v1608_v22  ;;  %v2120_v48 = vadd.f32 %v5208_v40, %v1616_v45  ;;  %v4275_v62 = vld [vmem:[%s5542_s11 + $0x188] sm:$0xff]   ;;  %v4277_v39 = vld [vmem:[%s5542_s11 + $0x1c0] sm:$0xff]   ;;  %v3737_v45 = vmul.f32 -1.442695, %v5202_v36 }
0x19c3   :  { %4450 = vpow2.f32 %v3729_v49  ;;  %v4274_v49 = vld [vmem:[%s5542_s11 + $0x108] sm:$0xff]   ;;  %v3733_v50 = vmul.f32 -1.442695, %v1995_v46  ;;  %v3735_v51 = vmul.f32 -1.442695, %v2036_v25  ;;  %v4308_v46 = vld [vmem:[%s5542_s11 + $0x240] sm:$0xff]  }
0x19c4   :  { %v4439_v58 = vpop.eup %4438  ;;  %4452 = vpow2.f32 %v3731_v54  ;;  %v3738_v40 = vmul.f32 -1.442695, %v2079_v14  ;;  %v3740_v54 = vmul.f32 -1.442695, %v2120_v48  ;;  %v4304_v26 = vld [vmem:[%s5542_s11 + $0x248] sm:$0xff]   ;;  %v4310_v36 = vld [vmem:[%s5542_s11 + $0x200] sm:$0xff]  }
0x19c5   :  { %v4441_v21 = vpop.eup %4440  ;;  %4454 = vpow2.f32 %v3734_v56  ;;  %v2220_v42 = vpack.c.bf16 %v4439_v58, %v4439_v58  ;;  %v4278_v56 = vld [vmem:[%s5542_s11 + $0x100] sm:$0xff]   ;;  %v4280_v58 = vld [vmem:[%s5542_s11 + $0x278] sm:$0xff]   ;;  %v4306_v22 = vld [vmem:[%s5542_s11 + $0x208] sm:$0xff]  }
0x19c6   :  { %v4443_v59 = vpop.eup %4442  ;;  %4456 = vpow2.f32 %v3736_v57  ;;  %v2222_v53 = vpack.c.bf16 %v4441_v21, %v4441_v21  ;;  %v4279_v57 = vld [vmem:[%s5542_s11 + $0x180] sm:$0xff]   ;;  %v4313_v14 = vld [vmem:[%s5542_s11 + $0x3f8] sm:$0xff]  }
0x19c7   :  { %v4445_v27 = vpop.eup %4444  ;;  %v2221_v60 = vpack.c.bf16 %v4443_v59, %v4443_v59  ;;  %v4281_v59 = vld [vmem:[%s5542_s11 + $0x2f8] sm:$0xff]   ;;  %v4311_v25 = vld [vmem:[%s5542_s11 + $0x280] sm:$0xff]  }
0x19c8   :  { %v2223_v31 = vpack.c.bf16 %v4445_v27, %v4445_v27 }
0x19c9   :  { %3299 = vmatprep.mubr.bf16.mxu0 %v2221_v60 }
0x19ca   :  { %3339 = vmatprep.mubr.bf16.mxu1 %v2223_v31  ;;  %3300 = vmatmul.mubr.bf16.vlgmr.msra.gmra.mxu0 %v2220_v42 }
0x19cb   :  { %3340 = vmatmul.mubr.bf16.vlgmr.msra.gmra.mxu1 %v2222_v53  ;;  %3965 = vmatpush3.bf16.msra.mxu0 %v4250_v13  ;;  %v4282_v13 = vld [vmem:[%s5542_s11 + $0x238] sm:$0xff]   ;;  %v4284_v53 = vld [vmem:[%s5542_s11 + $0x270] sm:$0xff]  }
0x19cc   :  { %3987 = vmatpush3.bf16.msra.mxu1 %v4251_v19  ;;  %3966 = vmatprep.subr.bf16.mxu0 %v4252_v61  ;;  %v4283_v19 = vld [vmem:[%s5542_s11 + $0x2b8] sm:$0xff]  }
0x19cd   :  { %3988 = vmatprep.subr.bf16.mxu1 %v4253_v52 }
0x19ce   :  { %v4447_v0 = vpop.eup %4446 }
0x19cf   :  { %v4449_v1 = vpop.eup %4448  ;;  %3967 = vmatpush3.bf16.msra.mxu0 %v4254_v4  ;;  %v2225_v2 = vpack.c.bf16 %v4447_v0, %v4447_v0  ;;  %v4285_v4 = vld [vmem:[%s5542_s11 + $0x2f0] sm:$0xff]   ;;  %v4288_v0 = vld [vmem:[%s5542_s11 + $0x268] sm:$0xff]  }
0x19d0   :  { %3989 = vmatpush3.bf16.msra.mxu1 %v4255_v20  ;;  %3968 = vmatprep.subr.bf16.mxu0 %v4256_v30  ;;  %v2227_v18 = vpack.c.bf16 %v4449_v1, %v4449_v1  ;;  %v4451_v6 = vpop.eup %4450  ;;  %v4286_v30 = vld [vmem:[%s5542_s11 + $0x230] sm:$0xff]   ;;  %v4289_v1 = vld [vmem:[%s5542_s11 + $0x2e8] sm:$0xff]  }
0x19d1   :  { %3379 = vmatprep.mubr.bf16.mxu0 %v2225_v2  ;;  %3990 = vmatprep.subr.bf16.mxu1 %v4257_v63  ;;  %v4453_v8 = vpop.eup %4452  ;;  %v2176_v12 = vadd.f32 1.0, %v4451_v6  ;;  %v4287_v63 = vld [vmem:[%s5542_s11 + $0x2b0] sm:$0xff]   ;;  %v4290_v2 = vld [vmem:[%s5542_s11 + $0x228] sm:$0xff]  }
0x19d2   :  { %3419 = vmatprep.mubr.bf16.mxu1 %v2227_v18  ;;  %v4455_v9 = vpop.eup %4454  ;;  %v2178_v33 = vadd.f32 1.0, %v4453_v8  ;;  %v4292_v18 = vld [vmem:[%s5542_s11 + $0x260] sm:$0xff]  }
0x19d3   :  { %3969 = vmatpush3.bf16.msra.mxu0 %v4258_v3  ;;  %v4457_v11 = vpop.eup %4456  ;;  %v2181_v23 = vadd.f32 1.0, %v4455_v9  ;;  %4458 = vrcp.f32 %v2176_v12  ;;  %v4291_v3 = vld [vmem:[%s5542_s11 + $0x2a8] sm:$0xff]   ;;  %v4294_v8 = vld [vmem:[%s5542_s11 + $0x220] sm:$0xff]   ;;  %v4296_v12 = vld [vmem:[%s5542_s11 + $0x258] sm:$0xff]  }
0x19d4   :  { %3991 = vmatpush3.bf16.msra.mxu1 %v4259_v5  ;;  %3970 = vmatprep.subr.bf16.mxu0 %v4260_v55  ;;  %v2183_v35 = vadd.f32 1.0, %v4457_v11  ;;  %4460 = vrcp.f32 %v2178_v33  ;;  %v4293_v55 = vld [vmem:[%s5542_s11 + $0x2e0] sm:$0xff]  }
0x19d5   :  { %3992 = vmatprep.subr.bf16.mxu1 %v4261_v7  ;;  %4462 = vrcp.f32 %v2181_v23  ;;  %v4295_v11 = vld [vmem:[%s5542_s11 + $0x2a0] sm:$0xff]   ;;  %v4298_v23 = vld [vmem:[%s5542_s11 + $0x218] sm:$0xff]  }
0x19d6   :  { %4464 = vrcp.f32 %v2183_v35  ;;  %v4299_v35 = vld [vmem:[%s5542_s11 + $0x298] sm:$0xff]  }
0x19d7   :  { %3971 = vmatpush3.bf16.msra.mxu0 %v4262_v10  ;;  %4466 = vpow2.f32 %v3733_v50  ;;  %v4314_v50 = vld [vmem:[%s5542_s11 + $0x338] sm:$0xff]  }
0x19d8   :  { %3993 = vmatpush3.bf16.msra.mxu1 %v4263_v15  ;;  %3972 = vmatprep.subr.bf16.mxu0 %v4264_v32  ;;  %4468 = vpow2.f32 %v3735_v51  ;;  %v4297_v32 = vld [vmem:[%s5542_s11 + $0x2d8] sm:$0xff]  }
0x19d9   :  { %3994 = vmatprep.subr.bf16.mxu1 %v4265_v34  ;;  %4470 = vpow2.f32 %v3738_v40  ;;  %v4315_v51 = vld [vmem:[%s5542_s11 + $0x3b8] sm:$0xff]   ;;  %v4316_v40 = vld [vmem:[%s5542_s11 + $0x370] sm:$0xff]  }
0x19da   :  { %4472 = vpow2.f32 %v3740_v54 }
0x19db   :  { %3973 = vmatpush3.bf16.msra.mxu0 %v4266_v38  ;;  %v4300_v38 = vld [vmem:[%s5542_s11 + $0x250] sm:$0xff]  }
0x19dc   :  { %3995 = vmatpush3.bf16.msra.mxu1 %v4267_v43  ;;  %3974 = vmatprep.subr.bf16.mxu0 %v4268_v44  ;;  %v4302_v43 = vld [vmem:[%s5542_s11 + $0x210] sm:$0xff]  }
0x19dd   :  { %3996 = vmatprep.subr.bf16.mxu1 %v4269_v28  ;;  %v4303_v44 = vld [vmem:[%s5542_s11 + $0x290] sm:$0xff]   ;;  %v4305_v28 = vld [vmem:[%s5542_s11 + $0x2c8] sm:$0xff]  }
0x19df   :  { %3975 = vmatpush3.bf16.msra.mxu0 %v4270_v16  ;;  %v4307_v16 = vld [vmem:[%s5542_s11 + $0x288] sm:$0xff]  }
0x19e0   :  { %3997 = vmatpush3.bf16.msra.mxu1 %v4271_v47  ;;  %3976 = vmatprep.subr.bf16.mxu0 %v4272_v24  ;;  %v4459_v21 = vpop.eup %4458  ;;  %v3739_v47 = vmul.f32 -1.442695, %v5204_v37  ;;  %v4309_v24 = vld [vmem:[%s5542_s11 + $0x2c0] sm:$0xff]   ;;  %v4312_v37 = vld [vmem:[%s5542_s11 + $0x378] sm:$0xff]  }
0x19e1   :  { %3998 = vmatprep.subr.bf16.mxu1 %v4273_v41  ;;  %v4461_v27 = vpop.eup %4460  ;;  %v2224_v42 = vpack.c.bf16 %v4459_v21, %v4459_v21  ;;  %v4319_v21 = vld [vmem:[%s5542_s11 + $0x3b0] sm:$0xff]  }
0x19e2   :  { %v4463_v60 = vpop.eup %4462  ;;  %v2226_v61 = vpack.c.bf16 %v4461_v27, %v4461_v27  ;;  %v4321_v27 = vld [vmem:[%s5542_s11 + $0x3e8] sm:$0xff]  }
0x19e3   :  { %3977 = vmatpush3.bf16.msra.mxu0 %v4274_v49  ;;  %v4465_v31 = vpop.eup %4464  ;;  %v2229_v52 = vpack.c.bf16 %v4463_v60, %v4463_v60  ;;  %v4322_v60 = vld [vmem:[%s5542_s11 + $0x328] sm:$0xff]  }
0x19e4   :  { %3999 = vmatpush3.bf16.msra.mxu1 %v4275_v62  ;;  %3978 = vmatprep.subr.bf16.mxu0 %v4276_v29  ;;  %v2231_v20 = vpack.c.bf16 %v4465_v31, %v4465_v31  ;;  %v4467_v5 = vpop.eup %4466  ;;  %v4324_v31 = vld [vmem:[%s5542_s11 + $0x360] sm:$0xff]  }
0x19e5   :  { %4000 = vmatprep.subr.bf16.mxu1 %v4277_v39  ;;  %v4469_v6 = vpop.eup %4468  ;;  %v2180_v10 = vadd.f32 1.0, %v4467_v5  ;;  %v4335_v5 = vld [vmem:[%s5542_s11 + $0x390] sm:$0xff]  }
0x19e6   :  { %v4471_v7 = vpop.eup %4470  ;;  %v2182_v15 = vadd.f32 1.0, %v4469_v6  ;;  %v4337_v6 = vld [vmem:[%s5542_s11 + $0x3c8] sm:$0xff]  }
0x19e7   :  { %3979 = vmatpush3.bf16.msra.mxu0 %v4278_v56  ;;  %v4473_v9 = vpop.eup %4472  ;;  %v2185_v33 = vadd.f32 1.0, %v4471_v7  ;;  %4474 = vrcp.f32 %v2180_v10  ;;  %v4317_v56 = vld [vmem:[%s5542_s11 + $0x3f0] sm:$0xff]   ;;  %v4338_v7 = vld [vmem:[%s5542_s11 + $0x308] sm:$0xff]   ;;  %v4341_v10 = vld [vmem:[%s5542_s11 + $0x3c0] sm:$0xff]  }
0x19e8   :  { %4001 = vmatpush3.bf16.msra.mxu1 %v4279_v57  ;;  %4008 = vmatprep.subr.bf16.mxu0 %v4280_v58  ;;  %v2187_v34 = vadd.f32 1.0, %v4473_v9  ;;  %4476 = vrcp.f32 %v2182_v15  ;;  %v4318_v58 = vld [vmem:[%s5542_s11 + $0x330] sm:$0xff]   ;;  %v4340_v9 = vld [vmem:[%s5542_s11 + $0x340] sm:$0xff]  }
0x19e9   :  { %4030 = vmatprep.subr.bf16.mxu1 %v4281_v59  ;;  %4478 = vrcp.f32 %v2185_v33  ;;  %v4320_v59 = vld [vmem:[%s5542_s11 + $0x368] sm:$0xff]  }
0x19ea   :  { %3380 = vmatmul.mubr.bf16.vlgmr.msra.gmra.mxu0 %v2224_v42  ;;  %4480 = vrcp.f32 %v2187_v34 }
0x19eb   :  { %3420 = vmatmul.mubr.bf16.vlgmr.msra.gmra.mxu1 %v2226_v61  ;;  %4009 = vmatpush3.bf16.msra.mxu0 %v4282_v13  ;;  %4482 = vpow2.f32 %v3737_v45  ;;  %v4323_v13 = vld [vmem:[%s5542_s11 + $0x3a8] sm:$0xff]  }
0x19ec   :  { %3459 = vmatprep.mubr.bf16.mxu0 %v2229_v52  ;;  %4031 = vmatpush3.bf16.msra.mxu1 %v4283_v19  ;;  %4484 = vpow2.f32 %v3739_v47  ;;  %v4325_v19 = vld [vmem:[%s5542_s11 + $0x3e0] sm:$0xff]  }
0x19ed   :  { %3499 = vmatprep.mubr.bf16.mxu1 %v2231_v20  ;;  %4010 = vmatprep.subr.bf16.mxu0 %v4284_v53  ;;  %v4326_v53 = vld [vmem:[%s5542_s11 + $0x320] sm:$0xff]   ;;  %v4328_v20 = vld [vmem:[%s5542_s11 + $0x358] sm:$0xff]  }
0x19ee   :  { %4032 = vmatprep.subr.bf16.mxu1 %v4285_v4  ;;  %v4327_v4 = vld [vmem:[%s5542_s11 + $0x3a0] sm:$0xff]  }
0x19ef   :  { %4011 = vmatpush3.bf16.msra.mxu0 %v4286_v30 }
0x19f0   :  { %4033 = vmatpush3.bf16.msra.mxu1 %v4287_v63  ;;  %4012 = vmatprep.subr.bf16.mxu0 %v4288_v0  ;;  %v4329_v63 = vld [vmem:[%s5542_s11 + $0x3d8] sm:$0xff]  }
0x19f1   :  { %4034 = vmatprep.subr.bf16.mxu1 %v4289_v1  ;;  %v4330_v0 = vld [vmem:[%s5542_s11 + $0x318] sm:$0xff]  }
0x19f2   :  { %v4331_v1 = vld [vmem:[%s5542_s11 + $0x398] sm:$0xff]  }
0x19f3   :  { %4013 = vmatpush3.bf16.msra.mxu0 %v4290_v2  ;;  %v4332_v2 = vld [vmem:[%s5542_s11 + $0x350] sm:$0xff]  }
0x19f4   :  { %4035 = vmatpush3.bf16.msra.mxu1 %v4291_v3  ;;  %4014 = vmatprep.subr.bf16.mxu0 %v4292_v18  ;;  %v4475_v41 = vpop.eup %4474  ;;  %v4333_v3 = vld [vmem:[%s5542_s11 + $0x3d0] sm:$0xff]  }
0x19f5   :  { %4036 = vmatprep.subr.bf16.mxu1 %v4293_v55  ;;  %v4477_v48 = vpop.eup %4476  ;;  %v2228_v29 = vpack.c.bf16 %v4475_v41, %v4475_v41  ;;  %v4334_v18 = vld [vmem:[%s5542_s11 + $0x310] sm:$0xff]   ;;  %v4336_v55 = vld [vmem:[%s5542_s11 + $0x348] sm:$0xff]  }
0x19f6   :  { %v4479_v49 = vpop.eup %4478  ;;  %v2230_v39 = vpack.c.bf16 %v4477_v48, %v4477_v48 }
0x19f7   :  { %4015 = vmatpush3.bf16.msra.mxu0 %v4294_v8  ;;  %v4481_v62 = vpop.eup %4480  ;;  %v2233_v54 = vpack.c.bf16 %v4479_v49, %v4479_v49  ;;  %v4339_v8 = vld [vmem:[%s5542_s11 + $0x388] sm:$0xff]  }
0x19f8   :  { %4037 = vmatpush3.bf16.msra.mxu1 %v4295_v11  ;;  %4016 = vmatprep.subr.bf16.mxu0 %v4296_v12  ;;  %v2235_v57 = vpack.c.bf16 %v4481_v62, %v4481_v62  ;;  %v4483_v42 = vpop.eup %4482  ;;  %v4342_v11 = vld [vmem:[%s5542_s11 + $0x300] sm:$0xff]  }
0x19f9   :  { %4038 = vmatprep.subr.bf16.mxu1 %v4297_v32  ;;  %v4485_v61 = vpop.eup %4484  ;;  %v2184_v52 = vadd.f32 1.0, %v4483_v42  ;;  %v4343_v12 = vld [vmem:[%s5542_s11 + $0x380] sm:$0xff]  }
0x19fa   :  { %v2186_v30 = vadd.f32 1.0, %v4485_v61 }
0x19fb   :  { %4017 = vmatpush3.bf16.msra.mxu0 %v4298_v23  ;;  %4486 = vrcp.f32 %v2184_v52  ;;  %v1244_v23 = vpop.trf.xlu1 }
0x19fc   :  { %4039 = vmatpush3.bf16.msra.mxu1 %v4299_v35  ;;  %4018 = vmatprep.subr.bf16.mxu0 %v4300_v38  ;;  %4488 = vrcp.f32 %v2186_v30  ;;  %1261 = vst.msk [vmem:[#allocation6 + $0x4] sm:$0xf] %vm1219_vm8, %v1244_v23 }
0x19fd   :  { %4040 = vmatprep.subr.bf16.mxu1 %v4301_v17 }
0x19ff   :  { %4019 = vmatpush3.bf16.msra.mxu0 %v4302_v43  ;;  %v1367_v35 = vpop.trf.xlu1 }
0x1a00   :  { %4041 = vmatpush3.bf16.msra.mxu1 %v4303_v44  ;;  %4020 = vmatprep.subr.bf16.mxu0 %v4304_v26  ;;  %1384 = vst.msk [vmem:[#allocation6 + $0x10] sm:$0xf] %vm1219_vm8, %v1367_v35  ;;  %v3741_v44 = vld [vmem:[%s5543_s12] ss:$0 sm:$0xff]  ;;  %s4544_s12 = smov [#allocation6]  }
0x1a01   :  { %4042 = vmatprep.subr.bf16.mxu1 %v4305_v28  ;;  %s3617_s5 = sshll.u32 %s4544_s12, 4  ;;  %s3618_s5 = int_to_ptr.vmem [resolvable:$true] %s3617_s5 }
0x1a02   :  { %s4494_s21 = scalar_lea.vmem %s3618_s5, 512  ;;  %p4499_p1 = scmp.lt.s32.totalorder %s3618_s5, %s3618_s5 }
0x1a03   :  { %4021 = vmatpush3.bf16.msra.mxu0 %v4306_v22  ;;  %v1449_v38 = vpop.trf.xlu1  ;;  %p4495_p0 = scmp.ne.s32.totalorder %s3618_s5, %s4494_s21  ;;  %p4500_p2 = scmp.lt.s32.totalorder %s4494_s21, %s4494_s21 }
0x1a04   :  { %4043 = vmatpush3.bf16.msra.mxu1 %v4307_v16  ;;  %4022 = vmatprep.subr.bf16.mxu0 %v4308_v46  ;;  %1466 = vst.msk [vmem:[#allocation6 + $0x18] sm:$0xf] %vm1219_vm8, %v1449_v38 }
0x1a05   :  { %4044 = vmatprep.subr.bf16.mxu1 %v4309_v24  ;;  %p4501_p3 = por %p4500_p2, %p4499_p1 }
0x1a07   :  { %4023 = vmatpush3.bf16.msra.mxu0 %v4310_v36  ;;  %p4502_p4 = pnand %p4501_p3, %p4495_p0 }
0x1a08   :  { %4045 = vmatpush3.bf16.msra.mxu1 %v4311_v25  ;;  %4052 = vmatprep.subr.bf16.mxu0 %v4312_v37  ;;  %v4487_v15 = vpop.eup %4486 }
0x1a09   :  { %4074 = vmatprep.subr.bf16.mxu1 %v4313_v14  ;;  %v4489_v32 = vpop.eup %4488  ;;  %v2232_v33 = vpack.c.bf16 %v4487_v15, %v4487_v15 }
0x1a0a   :  { %3460 = vmatmul.mubr.bf16.vlgmr.msra.gmra.mxu0 %v2228_v29  ;;  %v2234_v34 = vpack.c.bf16 %v4489_v32, %v4489_v32 }
0x1a0b   :  { %3500 = vmatmul.mubr.bf16.vlgmr.msra.gmra.mxu1 %v2230_v39  ;;  %4053 = vmatpush3.bf16.msra.mxu0 %v4314_v50 }
0x1a0c   :  { %3539 = vmatprep.mubr.bf16.mxu0 %v2233_v54  ;;  %4075 = vmatpush3.bf16.msra.mxu1 %v4315_v51 }
0x1a0d   :  { %3579 = vmatprep.mubr.bf16.mxu1 %v2235_v57  ;;  %4054 = vmatprep.subr.bf16.mxu0 %v4316_v40 }
0x1a0e   :  { %4076 = vmatprep.subr.bf16.mxu1 %v4317_v56 }
0x1a0f   :  { %4055 = vmatpush3.bf16.msra.mxu0 %v4318_v58 }
0x1a10   :  { %4077 = vmatpush3.bf16.msra.mxu1 %v4319_v21  ;;  %4056 = vmatprep.subr.bf16.mxu0 %v4320_v59 }
0x1a11   :  { %4078 = vmatprep.subr.bf16.mxu1 %v4321_v27 }
0x1a13   :  { %4057 = vmatpush3.bf16.msra.mxu0 %v4322_v60 }
0x1a14   :  { %4079 = vmatpush3.bf16.msra.mxu1 %v4323_v13  ;;  %4058 = vmatprep.subr.bf16.mxu0 %v4324_v31 }
0x1a15   :  { %4080 = vmatprep.subr.bf16.mxu1 %v4325_v19 }
0x1a17   :  { %4059 = vmatpush3.bf16.msra.mxu0 %v4326_v53 }
0x1a18   :  { %4081 = vmatpush3.bf16.msra.mxu1 %v4327_v4  ;;  %4060 = vmatprep.subr.bf16.mxu0 %v4328_v20 }
0x1a19   :  { %4082 = vmatprep.subr.bf16.mxu1 %v4329_v63 }
0x1a1b   :  { %4061 = vmatpush3.bf16.msra.mxu0 %v4330_v0 }
0x1a1c   :  { %4083 = vmatpush3.bf16.msra.mxu1 %v4331_v1  ;;  %4062 = vmatprep.subr.bf16.mxu0 %v4332_v2 }
0x1a1d   :  { %4084 = vmatprep.subr.bf16.mxu1 %v4333_v3 }
0x1a1f   :  { %4063 = vmatpush3.bf16.msra.mxu0 %v4334_v18 }
0x1a20   :  { %4085 = vmatpush3.bf16.msra.mxu1 %v4335_v5  ;;  %4064 = vmatprep.subr.bf16.mxu0 %v4336_v55 }
0x1a21   :  { %4086 = vmatprep.subr.bf16.mxu1 %v4337_v6  ;;  %v1203_v6 = vpop.trf.xlu0 }
0x1a22   :  { %1220 = vst.msk [vmem:[#allocation6] sm:$0xf] %vm1219_vm8, %v1203_v6 }
0x1a23   :  { %4065 = vmatpush3.bf16.msra.mxu0 %v4338_v7 }
0x1a24   :  { %4087 = vmatpush3.bf16.msra.mxu1 %v4339_v8  ;;  %4066 = vmatprep.subr.bf16.mxu0 %v4340_v9 }
0x1a25   :  { %4088 = vmatprep.subr.bf16.mxu1 %v4341_v10  ;;  %v1285_v7 = vpop.trf.xlu0 }
0x1a26   :  { %1302 = vst.msk [vmem:[#allocation6 + $0x8] sm:$0xf] %vm1219_vm8, %v1285_v7 }
0x1a27   :  { %4067 = vmatpush3.bf16.msra.mxu0 %v4342_v11 }
0x1a28   :  { %4089 = vmatpush3.bf16.msra.mxu1 %v4343_v12 }
0x1a29   :  { %v1326_v8 = vpop.trf.xlu0 }
0x1a2a   :  { %3540 = vmatmul.mubr.bf16.vlgmr.msra.gmra.mxu0 %v2232_v33  ;;  %1343 = vst.msk [vmem:[#allocation6 + $0xc] sm:$0xf] %vm1219_vm8, %v1326_v8 }
0x1a2b   :  { %3580 = vmatmul.mubr.bf16.vlgmr.msra.gmra.mxu1 %v2234_v34 }
0x1a2d   :  { %v1408_v9 = vpop.trf.xlu0 }
0x1a2e   :  { %1425 = vst.msk [vmem:[#allocation6 + $0x14] sm:$0xf] %vm1219_vm8, %v1408_v9 }
0x1a31   :  { %v1490_v10 = vpop.trf.xlu0 }
0x1a32   :  { %1507 = vst.msk [vmem:[#allocation6 + $0x1c] sm:$0xf] %vm1219_vm8, %v1490_v10 }
0x1a8a   :  { %v3936_v17 = vpop.f32.mrf.mxu0 }
0x1a8b   :  { %v3958_v43 = vpop.f32.mrf.mxu1 }
0x1a8c   :  { %v3937_v26 = vpop.f32.mrf.mxu0 }
0x1a8d   :  { %v3938_v28 = vadd.f32 %v3937_v26, %v3936_v17  ;;  %v3959_v22 = vpop.f32.mrf.mxu1 }
0x1a8e   :  { %v3960_v45 = vadd.f32 %v3959_v22, %v3958_v43  ;;  %v3939_v16 = vpop.f32.mrf.mxu0 }
0x1a8f   :  { %v3302_v46 = vadd.f32 %v3938_v28, %v3741_v44  ;;  %v3961_v47 = vpop.f32.mrf.mxu1 }
0x1a90   :  { %v3940_v24 = vpop.f32.mrf.mxu0 }
0x1a91   :  { %v3342_v36 = vadd.f32 %v3960_v45, %v3302_v46  ;;  %v3962_v25 = vpop.f32.mrf.mxu1 }
0x1aaa   :  { %v3980_v37 = vpop.f32.mrf.mxu0 }
0x1aab   :  { %v4002_v41 = vpop.f32.mrf.mxu1 }
0x1aac   :  { %v3981_v14 = vpop.f32.mrf.mxu0 }
0x1aad   :  { %v4003_v48 = vpop.f32.mrf.mxu1  ;;  %v3982_v59 = vadd.f32 %v3981_v14, %v3980_v37 }
0x1aae   :  { %v3983_v49 = vpop.f32.mrf.mxu0  ;;  %v4004_v60 = vadd.f32 %v4003_v48, %v4002_v41 }
0x1aaf   :  { %v4005_v50 = vpop.f32.mrf.mxu1  ;;  %v3382_v27 = vadd.f32 %v3982_v59, %v3342_v36 }
0x1ab0   :  { %v3984_v62 = vpop.f32.mrf.mxu0 }
0x1ab1   :  { %v4006_v29 = vpop.f32.mrf.mxu1  ;;  %v3422_v31 = vadd.f32 %v4004_v60, %v3382_v27 }
0x1aca   :  { %v4024_v51 = vpop.f32.mrf.mxu0 }
0x1acb   :  { %v4046_v39 = vpop.f32.mrf.mxu1 }
0x1acc   :  { %v4025_v40 = vpop.f32.mrf.mxu0 }
0x1acd   :  { %v4047_v54 = vpop.f32.mrf.mxu1  ;;  %v4026_v13 = vadd.f32 %v4025_v40, %v4024_v51 }
0x1ace   :  { %v4027_v56 = vpop.f32.mrf.mxu0  ;;  %v4048_v61 = vadd.f32 %v4047_v54, %v4046_v39 }
0x1acf   :  { %v4049_v57 = vpop.f32.mrf.mxu1  ;;  %v3462_v42 = vadd.f32 %v4026_v13, %v3422_v31 }
0x1ad0   :  { %v4028_v58 = vpop.f32.mrf.mxu0 }
0x1ad1   :  { %v4050_v21 = vpop.f32.mrf.mxu1  ;;  %v3502_v4 = vadd.f32 %v4048_v61, %v3462_v42 }
0x1aea   :  { %v4068_v19 = vpop.f32.mrf.mxu0 }
0x1aeb   :  { %v4090_v53 = vpop.f32.mrf.mxu1 }
0x1aec   :  { %v4069_v52 = vpop.f32.mrf.mxu0 }
0x1aed   :  { %v4070_v20 = vadd.f32 %v4069_v52, %v4068_v19  ;;  %v4091_v30 = vpop.f32.mrf.mxu1 }
0x1aee   :  { %v4071_v63 = vpop.f32.mrf.mxu0  ;;  %v4092_v1 = vadd.f32 %v4091_v30, %v4090_v53 }
0x1aef   :  { %v3542_v0 = vadd.f32 %v4070_v20, %v3502_v4  ;;  %v4093_v2 = vpop.f32.mrf.mxu1 }
0x1af0   :  { %v4072_v3 = vpop.f32.mrf.mxu0 }
0x1af1   :  { %v3582_v18 = vadd.f32 %v4092_v1, %v3542_v0  ;;  %v4094_v5 = vpop.f32.mrf.mxu1 }
0x1af3   :  { %v3588_v55 = vsel %vm3587_vm9, %v3582_v18, -inf }
0x1af4   :  { %3589 = vmax.xlane.f32.xlu1 %v3588_v55 }
0x1b7d   :  { %v3590_v11 = vpop.xlane.xlu1 %3589 }
0x1b7e   :  { %v3591_v12 = vsub.f32 %v3582_v18, %v3590_v11 }
0x1b80   :  { %v3592_v15 = vmul.f32 1.442695, %v3591_v12 }
0x1b82   :  { %4490 = vpow2.f32 %v3592_v15 }
0x1b8f   :  { %v4491_v32 = vpop.eup %4490 }
0x1b90   :  { %v3594_v33 = vsel %vm3587_vm9, %v4491_v32, 0.0 }
0x1b91   :  { %3595 = vadd.xlane.f32.xlu0 %v3594_v33 }
0x1b92   :  { %4505 = shalt.err (!%p4502_p4)
}
0x1b93   :  { %s4545_s22 = smov 4   ;;  %s4546_s7 = smov [#allocation4]  }
0x1b94   :  { %3623 = dma.vmem_to_hbm [thread:$0]  %s3618_s5, 512, %s5545_s14, [#allocation7], %s4542_s2, %s4542_s2, %s4545_s22  }
0x1b95   :  { %s3608_s8 = sshll.u32 %s4546_s7, 4  ;;  %s3609_s8 = int_to_ptr.vmem [resolvable:$true] %s3608_s8 }
0x1b96   :  { %s4514_s24 = scalar_lea.vmem %s3609_s8, 128  ;;  %p4519_p6 = scmp.lt.s32.totalorder %s3609_s8, %s3609_s8 }
0x1b97   :  { %p4515_p5 = scmp.ne.s32.totalorder %s3609_s8, %s4514_s24  ;;  %p4520_p7 = scmp.lt.s32.totalorder %s4514_s24, %s4514_s24 }
0x1b99   :  { %p4521_p8 = por %p4520_p7, %p4519_p6 }
0x1b9b   :  { %p4522_p9 = pnand %p4521_p8, %p4515_p5 }
0x1c1a   :  { %v3596_v34 = vpop.xlane.xlu0 %3595 }
0x1c1b   :  { %4492 = vlog2.f32 %v3596_v34 }
0x1c28   :  { %v4493_v23 = vpop.eup %4492 }
0x1c29   :  { %v3598_v35 = vmul.f32 0.6931472, %v4493_v23 }
0x1c2b   :  { %v3599_v38 = vadd.f32 %v3598_v35, %v3590_v11 }
0x1c2d   :  { %v3600_v17 = vsub.f32 %v3582_v18, %v3599_v38 }
0x1c2f   :  { %3601 = vst.msk [vmem:[#allocation4] sm:$0xff] %vm3587_vm9, %v3600_v17 }
0x1c30   :  { %4525 = shalt.err (!%p4522_p9)
}
0x1c31   :  { %3611 = dma.vmem_to_hbm [thread:$0]  %s3609_s8, 128, %s5544_s13, [#allocation5]  }
0x1c32   :  { %4534 = dma.done.wait [#allocation5], 128  }
0x1c33   :  { %4535 = vsyncadd [#allocation5], 4294967168 }
0x1c34   :  { %4536 = dma.done.wait [#allocation7], 512  }
0x1c35   :  { %4537 = vsyncadd [#allocation7], 4294966784 }
0x1c36   :  { %3630 = vsyncpa [#allocation5], 1 }
0x1c37   :  { %3631 = vsyncpa [#allocation7], 1 }

</bundles_post_ra>
